<compile_context>
chip_gen: v7x
topology: tpu7x:2x2x1
jax: 0.10.0
libtpu: 0.0.40
codegen_flags: <defaults>
</compile_context>

<pallas_src>
import jax
import jax.numpy as jnp
from jax.experimental import pallas as pl
from jax.experimental.pallas import tpu as pltpu


# ---------------------------------------------------------------------------
# Kernel
# ---------------------------------------------------------------------------
def basic_block_kernel(x_ref, wt1_ref, s1_ref, b1_ref, wt2_ref, s2_ref, b2_ref,
                       o_ref, xpad_ref, ypad_ref):
    """Fused BasicBlock forward for one batch element.

    x_ref   : (1, D, H*W*Cin)      input activation (lane-dense)
    wt*_ref : (3, H*W*Cin, H*W*Cout) Toeplitz-folded conv weights (one per kd)
    s*/b*   : (1, H*W*Cout)        folded BN scale / shift (f32, channel-tiled)
    o_ref   : (1, D, H*W*Cout)     output
    xpad/ypad_ref : (D+2, H*W*C)   VMEM scratch, zero D-halo (in-kernel padding)
    """
    D = o_ref.shape[1]

    def conv3d(src_pad_ref, wt_ref):
        # One K = H*W*Cin matmul per kd tap; H/W padding is inside wt, D padding
        # is the zero halo rows of the scratch.  Accumulate in f32.
        acc = jnp.dot(src_pad_ref[0:D, :], wt_ref[0],
                      preferred_element_type=jnp.float32)
        acc = acc + jnp.dot(src_pad_ref[1:D + 1, :], wt_ref[1],
                            preferred_element_type=jnp.float32)
        acc = acc + jnp.dot(src_pad_ref[2:D + 2, :], wt_ref[2],
                            preferred_element_type=jnp.float32)
        return acc                                   # (D, H*W*Cout) f32

    x = x_ref[0]                                     # (D, H*W*Cin), input dtype

    # ---- conv1 -> bn1 -> relu -------------------------------------------------
    xpad_ref[...] = jnp.zeros_like(xpad_ref)         # zero D-halo (rows 0, D+1)
    xpad_ref[1:D + 1, :] = x
    y1 = conv3d(xpad_ref, wt1_ref)
    y1 = jnp.maximum(y1 * s1_ref[...] + b1_ref[...], 0.0)   # lane-dense VPU math

    # ---- conv2 -> bn2 -> (+residual) -> relu ----------------------------------
    ypad_ref[...] = jnp.zeros_like(ypad_ref)
    ypad_ref[1:D + 1, :] = y1.astype(ypad_ref.dtype)
    y2 = conv3d(ypad_ref, wt2_ref)
    y2 = y2 * s2_ref[...] + b2_ref[...]
    y2 = y2 + x.astype(jnp.float32)                  # identity residual (in VMEM)
    y2 = jnp.maximum(y2, 0.0)

    o_ref[...] = y2.reshape(1, D, y2.shape[-1]).astype(o_ref.dtype)


# ---------------------------------------------------------------------------
# Wrapper-side weight folding
# ---------------------------------------------------------------------------
def _toeplitz_weights(w, H, W):
    """Fold the (kh, kw) taps and the H/W zero-padding of a 3x3x3 conv into
    three lane-dense (H*W*Cin, H*W*Cout) matmul slabs, one per kd tap."""
    _, _, _, Cin, Cout = w.shape
    HW = H * W
    hv = jnp.arange(H)
    wv = jnp.arange(W)
    p_out = (hv[:, None] * W + wv[None, :]).reshape(-1)            # (HW,)

    slabs = []
    for kd in range(3):
        acc = jnp.zeros((HW * Cin, HW * Cout), jnp.float32)
        for kh in range(3):
            for kw in range(3):
                h_in = hv[:, None] + (kh - 1)                       # (H, 1)
                w_in = wv[None, :] + (kw - 1)                       # (1, W)
                valid = ((h_in >= 0) & (h_in < H) &
                         (w_in >= 0) & (w_in < W))                  # (H, W)
                p_in = (jnp.clip(h_in, 0, H - 1) * W +
                        jnp.clip(w_in, 0, W - 1))                   # (H, W)
                sel = jnp.zeros((HW, HW), jnp.float32).at[
                    p_in.reshape(-1), p_out].add(
                        valid.reshape(-1).astype(jnp.float32))
                tap = jnp.einsum("pq,io->piqo", sel,
                                 w[kd, kh, kw].astype(jnp.float32))
                acc = acc + tap.reshape(HW * Cin, HW * Cout)
        slabs.append(acc)
    return jnp.stack(slabs, axis=0)                                 # (3, HWCi, HWCo)


# ---------------------------------------------------------------------------
# Forward wrapper
# ---------------------------------------------------------------------------
def basic_block_forward(x_ndhwc, params):
    """Fused BasicBlock forward (stride=1, downsample=None => in_planes==planes)."""
    N, D, H, W, Cin = x_ndhwc.shape
    Cout = params["w1"].shape[-1]
    assert Cin == Cout, "identity residual path requires in_planes == planes"
    HWC = H * W * Cin
    dt = x_ndhwc.dtype

    # Lane-dense, MXU-ready weight slabs (kept in the activation dtype; no upcast).
    wt1 = _toeplitz_weights(params["w1"], H, W).astype(dt)
    wt2 = _toeplitz_weights(params["w2"], H, W).astype(dt)

    # Folded BN scale/shift tiled to a lane-dense (1, H*W*C) f32 row.
    def bn_row(v):
        return jnp.tile(v.astype(jnp.float32), H * W).reshape(1, HWC)

    s1, b1 = bn_row(params["scale1"]), bn_row(params["shift1"])
    s2, b2 = bn_row(params["scale2"]), bn_row(params["shift2"])

    # Lane-dense activation layout: (N, D, H*W*C)  (free, contiguous reshape).
    x_flat = x_ndhwc.reshape(N, D, HWC)

    out_flat = pl.pallas_call(
        basic_block_kernel,
        out_shape=jax.ShapeDtypeStruct((N, D, HWC), dt),
        grid_spec=pltpu.PrefetchScalarGridSpec(
            num_scalar_prefetch=0,
            grid=(N,),
            in_specs=[
                pl.BlockSpec((1, D, HWC), lambda n: (n, 0, 0)),      # x
                pl.BlockSpec((3, HWC, HWC), lambda n: (0, 0, 0)),    # wt1
                pl.BlockSpec((1, HWC), lambda n: (0, 0)),            # scale1
                pl.BlockSpec((1, HWC), lambda n: (0, 0)),            # shift1
                pl.BlockSpec((3, HWC, HWC), lambda n: (0, 0, 0)),    # wt2
                pl.BlockSpec((1, HWC), lambda n: (0, 0)),            # scale2
                pl.BlockSpec((1, HWC), lambda n: (0, 0)),            # shift2
            ],
            out_specs=pl.BlockSpec((1, D, HWC), lambda n: (n, 0, 0)),
            scratch_shapes=[
                pltpu.VMEM((D + 2, HWC), dt),   # zero-D-halo input staging
                pltpu.VMEM((D + 2, HWC), dt),   # zero-D-halo conv1-output staging
            ],
        ),
        compiler_params=pltpu.CompilerParams(
            dimension_semantics=("parallel",)),
        # TODO(synk): for large volumes add a D-tile grid axis (halo of 2 for the
        # fused block) and set vmem_limit_bytes explicitly for v7x's 64 MiB VMEM.
    )(x_flat, wt1, s1, b1, wt2, s2, b2)

    return out_flat.reshape(N, D, H, W, Cout)


# ---------------------------------------------------------------------------
# Params + pure-JAX reference
# ---------------------------------------------------------------------------
def make_params(key, in_planes, planes, eps=1e-5):
    k1, k2, k3, k4, k5, k6 = jax.random.split(key, 6)
    w1 = jax.random.normal(k1, (3, 3, 3, in_planes, planes), jnp.float32) * 0.1
    w2 = jax.random.normal(k2, (3, 3, 3, planes, planes), jnp.float32) * 0.1
    # BatchNorm3d params (inference mode), deterministic but non-trivial.
    gamma1 = 1.0 + 0.1 * jax.random.normal(k3, (planes,), jnp.float32)
    beta1 = 0.05 * jax.random.normal(k4, (planes,), jnp.float32)
    mean1 = 0.02 * jnp.arange(planes, dtype=jnp.float32)
    var1 = 1.0 + 0.01 * jnp.arange(planes, dtype=jnp.float32)
    gamma2 = 1.0 + 0.1 * jax.random.normal(k5, (planes,), jnp.float32)
    beta2 = 0.05 * jax.random.normal(k6, (planes,), jnp.float32)
    mean2 = -0.01 * jnp.arange(planes, dtype=jnp.float32)
    var2 = 1.0 + 0.02 * jnp.arange(planes, dtype=jnp.float32)

    scale1 = gamma1 / jnp.sqrt(var1 + eps)
    shift1 = beta1 - mean1 * scale1
    scale2 = gamma2 / jnp.sqrt(var2 + eps)
    shift2 = beta2 - mean2 * scale2
    return dict(w1=w1, w2=w2, scale1=scale1, shift1=shift1,
                scale2=scale2, shift2=shift2)


def _reference_forward(x_ndhwc, params):
    """Pure-JAX reference (lax.conv) for correctness check."""
    def conv(x, w):
        return jax.lax.conv_general_dilated(
            x, w, window_strides=(1, 1, 1), padding=((1, 1),) * 3,
            dimension_numbers=("NDHWC", "DHWIO", "NDHWC"))

    out = conv(x_ndhwc, params["w1"]) * params["scale1"] + params["shift1"]
    out = jnp.maximum(out, 0.0)
    out = conv(out, params["w2"]) * params["scale2"] + params["shift2"]
    out = out + x_ndhwc
    return jnp.maximum(out, 0.0)


# ---------------------------------------------------------------------------
if __name__ == "__main__":
    key = jax.random.PRNGKey(0)
    kx, kp = jax.random.split(key)

    N, C, D, H, W = 2, 4, 8, 8, 8          # in_planes = planes = 4, stride = 1
    # PyTorch-style NCDHW input, permuted to NDHWC for the kernel.
    x_ncdhw = jax.random.normal(kx, (N, C, D, H, W), jnp.float32)
    x = jnp.transpose(x_ncdhw, (0, 2, 3, 4, 1))  # layout: NDHWC

    params = make_params(kp, in_planes=C, planes=C)

    out = basic_block_forward(x, params)
    out = jax.block_until_ready(out)

    ref = _reference_forward(x, params)
    assert out.shape == (N, D, H, W, C)
    assert jnp.allclose(out, ref, atol=1e-3, rtol=1e-3)

    print("KERNEL_OK")
</pallas_src>

<mosaic_0001>
module attributes {stable_mosaic.version = 11 : i64} {
  func.func @basic_block_kernel(%arg0: i32, %arg1: memref<1x8x256xf32, #tpu.memory_space<vmem>>, %arg2: memref<3x256x256xf32, #tpu.memory_space<vmem>>, %arg3: memref<1x256xf32, #tpu.memory_space<vmem>>, %arg4: memref<1x256xf32, #tpu.memory_space<vmem>>, %arg5: memref<3x256x256xf32, #tpu.memory_space<vmem>>, %arg6: memref<1x256xf32, #tpu.memory_space<vmem>>, %arg7: memref<1x256xf32, #tpu.memory_space<vmem>>, %arg8: memref<1x8x256xf32, #tpu.memory_space<vmem>>, %arg9: memref<10x256xf32, #tpu.memory_space<vmem>>, %arg10: memref<10x256xf32, #tpu.memory_space<vmem>>) attributes {dimension_semantics = [#tpu.dimension_semantics<parallel>], iteration_bounds = array<i64: 2>, scalar_prefetch = 0 : i64, scratch_operands = 2 : i64, tpu.core_type = #tpu.core_type<tc>, window_params = [{transform_indices = @transform_0, window_bounds = array<i64: 1, 8, 256>}, {pipeline_mode = #tpu.pipeline_mode<synchronous>, transform_indices = @transform_1, window_bounds = array<i64: 3, 256, 256>}, {pipeline_mode = #tpu.pipeline_mode<synchronous>, transform_indices = @transform_2, window_bounds = array<i64: 1, 256>}, {pipeline_mode = #tpu.pipeline_mode<synchronous>, transform_indices = @transform_3, window_bounds = array<i64: 1, 256>}, {pipeline_mode = #tpu.pipeline_mode<synchronous>, transform_indices = @transform_4, window_bounds = array<i64: 3, 256, 256>}, {pipeline_mode = #tpu.pipeline_mode<synchronous>, transform_indices = @transform_5, window_bounds = array<i64: 1, 256>}, {pipeline_mode = #tpu.pipeline_mode<synchronous>, transform_indices = @transform_6, window_bounds = array<i64: 1, 256>}, {transform_indices = @transform_7, window_bounds = array<i64: 1, 8, 256>}]} {
    %c0 = arith.constant 0 : index
    %c0_0 = arith.constant 0 : index
    %c0_1 = arith.constant 0 : index
    %0 = vector.load %arg1[%c0, %c0_0, %c0_1] : memref<1x8x256xf32, #tpu.memory_space<vmem>>, vector<1x8x256xf32>
    %1 = vector.shape_cast %0 : vector<1x8x256xf32> to vector<8x256xf32>
    %cst = arith.constant 0.000000e+00 : f32
    %2 = vector.broadcast %cst : f32 to vector<10x256xf32>
    %c0_2 = arith.constant 0 : index
    %c0_3 = arith.constant 0 : index
    %3 = vector.load %arg9[%c0_2, %c0_3] : memref<10x256xf32, #tpu.memory_space<vmem>>, vector<10x256xf32>
    tpu.vector_store %arg9[%c0_2, %c0_3], %2 {strides = array<i32>} : memref<10x256xf32, #tpu.memory_space<vmem>>, vector<10x256xf32>,
    %c1 = arith.constant 1 : index
    %c0_4 = arith.constant 0 : index
    %4 = vector.load %arg9[%c1, %c0_4] : memref<10x256xf32, #tpu.memory_space<vmem>>, vector<8x256xf32>
    tpu.vector_store %arg9[%c1, %c0_4], %1 {strides = array<i32>} : memref<10x256xf32, #tpu.memory_space<vmem>>, vector<8x256xf32>,
    %c0_5 = arith.constant 0 : index
    %c0_6 = arith.constant 0 : index
    %5 = vector.load %arg9[%c0_5, %c0_6] : memref<10x256xf32, #tpu.memory_space<vmem>>, vector<8x256xf32>
    %c0_7 = arith.constant 0 : index
    %c0_8 = arith.constant 0 : index
    %c0_9 = arith.constant 0 : index
    %6 = vector.load %arg2[%c0_7, %c0_8, %c0_9] : memref<3x256x256xf32, #tpu.memory_space<vmem>>, vector<1x256x256xf32>
    %7 = vector.shape_cast %6 : vector<1x256x256xf32> to vector<256x256xf32>
    %cst_10 = arith.constant dense<0.000000e+00> : vector<8x256xf32>
    %8 = tpu.matmul %5, %7, %cst_10 {dimension_numbers = #tpu.dot_dimension_numbers<[1], [0], [0], [1], [0, 0, 1, 1], [], []>} : vector<8x256xf32>, vector<256x256xf32>, vector<8x256xf32> -> vector<8x256xf32>
    %c1_11 = arith.constant 1 : index
    %c0_12 = arith.constant 0 : index
    %9 = vector.load %arg9[%c1_11, %c0_12] : memref<10x256xf32, #tpu.memory_space<vmem>>, vector<8x256xf32>
    %c1_13 = arith.constant 1 : index
    %c0_14 = arith.constant 0 : index
    %c0_15 = arith.constant 0 : index
    %10 = vector.load %arg2[%c1_13, %c0_14, %c0_15] : memref<3x256x256xf32, #tpu.memory_space<vmem>>, vector<1x256x256xf32>
    %11 = vector.shape_cast %10 : vector<1x256x256xf32> to vector<256x256xf32>
    %cst_16 = arith.constant dense<0.000000e+00> : vector<8x256xf32>
    %12 = tpu.matmul %9, %11, %cst_16 {dimension_numbers = #tpu.dot_dimension_numbers<[1], [0], [0], [1], [0, 0, 1, 1], [], []>} : vector<8x256xf32>, vector<256x256xf32>, vector<8x256xf32> -> vector<8x256xf32>
    %13 = arith.addf %8, %12 : vector<8x256xf32>
    %c2 = arith.constant 2 : index
    %c0_17 = arith.constant 0 : index
    %14 = vector.load %arg9[%c2, %c0_17] : memref<10x256xf32, #tpu.memory_space<vmem>>, vector<8x256xf32>
    %c2_18 = arith.constant 2 : index
    %c0_19 = arith.constant 0 : index
    %c0_20 = arith.constant 0 : index
    %15 = vector.load %arg2[%c2_18, %c0_19, %c0_20] : memref<3x256x256xf32, #tpu.memory_space<vmem>>, vector<1x256x256xf32>
    %16 = vector.shape_cast %15 : vector<1x256x256xf32> to vector<256x256xf32>
    %cst_21 = arith.constant dense<0.000000e+00> : vector<8x256xf32>
    %17 = tpu.matmul %14, %16, %cst_21 {dimension_numbers = #tpu.dot_dimension_numbers<[1], [0], [0], [1], [0, 0, 1, 1], [], []>} : vector<8x256xf32>, vector<256x256xf32>, vector<8x256xf32> -> vector<8x256xf32>
    %18 = arith.addf %13, %17 : vector<8x256xf32>
    %c0_22 = arith.constant 0 : index
    %c0_23 = arith.constant 0 : index
    %19 = vector.load %arg3[%c0_22, %c0_23] : memref<1x256xf32, #tpu.memory_space<vmem>>, vector<1x256xf32>
    %20 = vector.broadcast %19 : vector<1x256xf32> to vector<8x256xf32>
    %21 = arith.mulf %18, %20 : vector<8x256xf32>
    %c0_24 = arith.constant 0 : index
    %c0_25 = arith.constant 0 : index
    %22 = vector.load %arg4[%c0_24, %c0_25] : memref<1x256xf32, #tpu.memory_space<vmem>>, vector<1x256xf32>
    %23 = vector.broadcast %22 : vector<1x256xf32> to vector<8x256xf32>
    %24 = arith.addf %21, %23 : vector<8x256xf32>
    %cst_26 = arith.constant 0.000000e+00 : f32
    %25 = vector.broadcast %cst_26 : f32 to vector<8x256xf32>
    %26 = arith.maximumf %24, %25 : vector<8x256xf32>
    %cst_27 = arith.constant 0.000000e+00 : f32
    %27 = vector.broadcast %cst_27 : f32 to vector<10x256xf32>
    %c0_28 = arith.constant 0 : index
    %c0_29 = arith.constant 0 : index
    %28 = vector.load %arg10[%c0_28, %c0_29] : memref<10x256xf32, #tpu.memory_space<vmem>>, vector<10x256xf32>
    tpu.vector_store %arg10[%c0_28, %c0_29], %27 {strides = array<i32>} : memref<10x256xf32, #tpu.memory_space<vmem>>, vector<10x256xf32>,
    %c1_30 = arith.constant 1 : index
    %c0_31 = arith.constant 0 : index
    %29 = vector.load %arg10[%c1_30, %c0_31] : memref<10x256xf32, #tpu.memory_space<vmem>>, vector<8x256xf32>
    tpu.vector_store %arg10[%c1_30, %c0_31], %26 {strides = array<i32>} : memref<10x256xf32, #tpu.memory_space<vmem>>, vector<8x256xf32>,
    %c0_32 = arith.constant 0 : index
    %c0_33 = arith.constant 0 : index
    %30 = vector.load %arg10[%c0_32, %c0_33] : memref<10x256xf32, #tpu.memory_space<vmem>>, vector<8x256xf32>
    %c0_34 = arith.constant 0 : index
    %c0_35 = arith.constant 0 : index
    %c0_36 = arith.constant 0 : index
    %31 = vector.load %arg5[%c0_34, %c0_35, %c0_36] : memref<3x256x256xf32, #tpu.memory_space<vmem>>, vector<1x256x256xf32>
    %32 = vector.shape_cast %31 : vector<1x256x256xf32> to vector<256x256xf32>
    %cst_37 = arith.constant dense<0.000000e+00> : vector<8x256xf32>
    %33 = tpu.matmul %30, %32, %cst_37 {dimension_numbers = #tpu.dot_dimension_numbers<[1], [0], [0], [1], [0, 0, 1, 1], [], []>} : vector<8x256xf32>, vector<256x256xf32>, vector<8x256xf32> -> vector<8x256xf32>
    %c1_38 = arith.constant 1 : index
    %c0_39 = arith.constant 0 : index
    %34 = vector.load %arg10[%c1_38, %c0_39] : memref<10x256xf32, #tpu.memory_space<vmem>>, vector<8x256xf32>
    %c1_40 = arith.constant 1 : index
    %c0_41 = arith.constant 0 : index
    %c0_42 = arith.constant 0 : index
    %35 = vector.load %arg5[%c1_40, %c0_41, %c0_42] : memref<3x256x256xf32, #tpu.memory_space<vmem>>, vector<1x256x256xf32>
    %36 = vector.shape_cast %35 : vector<1x256x256xf32> to vector<256x256xf32>
    %cst_43 = arith.constant dense<0.000000e+00> : vector<8x256xf32>
    %37 = tpu.matmul %34, %36, %cst_43 {dimension_numbers = #tpu.dot_dimension_numbers<[1], [0], [0], [1], [0, 0, 1, 1], [], []>} : vector<8x256xf32>, vector<256x256xf32>, vector<8x256xf32> -> vector<8x256xf32>
    %38 = arith.addf %33, %37 : vector<8x256xf32>
    %c2_44 = arith.constant 2 : index
    %c0_45 = arith.constant 0 : index
    %39 = vector.load %arg10[%c2_44, %c0_45] : memref<10x256xf32, #tpu.memory_space<vmem>>, vector<8x256xf32>
    %c2_46 = arith.constant 2 : index
    %c0_47 = arith.constant 0 : index
    %c0_48 = arith.constant 0 : index
    %40 = vector.load %arg5[%c2_46, %c0_47, %c0_48] : memref<3x256x256xf32, #tpu.memory_space<vmem>>, vector<1x256x256xf32>
    %41 = vector.shape_cast %40 : vector<1x256x256xf32> to vector<256x256xf32>
    %cst_49 = arith.constant dense<0.000000e+00> : vector<8x256xf32>
    %42 = tpu.matmul %39, %41, %cst_49 {dimension_numbers = #tpu.dot_dimension_numbers<[1], [0], [0], [1], [0, 0, 1, 1], [], []>} : vector<8x256xf32>, vector<256x256xf32>, vector<8x256xf32> -> vector<8x256xf32>
    %43 = arith.addf %38, %42 : vector<8x256xf32>
    %c0_50 = arith.constant 0 : index
    %c0_51 = arith.constant 0 : index
    %44 = vector.load %arg6[%c0_50, %c0_51] : memref<1x256xf32, #tpu.memory_space<vmem>>, vector<1x256xf32>
    %45 = vector.broadcast %44 : vector<1x256xf32> to vector<8x256xf32>
    %46 = arith.mulf %43, %45 : vector<8x256xf32>
    %c0_52 = arith.constant 0 : index
    %c0_53 = arith.constant 0 : index
    %47 = vector.load %arg7[%c0_52, %c0_53] : memref<1x256xf32, #tpu.memory_space<vmem>>, vector<1x256xf32>
    %48 = vector.broadcast %47 : vector<1x256xf32> to vector<8x256xf32>
    %49 = arith.addf %46, %48 : vector<8x256xf32>
    %50 = arith.addf %49, %1 : vector<8x256xf32>
    %cst_54 = arith.constant 0.000000e+00 : f32
    %51 = vector.broadcast %cst_54 : f32 to vector<8x256xf32>
    %52 = arith.maximumf %50, %51 : vector<8x256xf32>
    %53 = vector.shape_cast %52 : vector<8x256xf32> to vector<1x8x256xf32>
    %c0_55 = arith.constant 0 : index
    %c0_56 = arith.constant 0 : index
    %c0_57 = arith.constant 0 : index
    %54 = vector.load %arg8[%c0_55, %c0_56, %c0_57] : memref<1x8x256xf32, #tpu.memory_space<vmem>>, vector<1x8x256xf32>
    tpu.vector_store %arg8[%c0_55, %c0_56, %c0_57], %53 {strides = array<i32>} : memref<1x8x256xf32, #tpu.memory_space<vmem>>, vector<1x8x256xf32>,
    return
  }
  func.func @transform_0(%arg0: i32) -> (i32, i32, i32) {
    %c0_i32 = arith.constant 0 : i32
    %c0_i32_0 = arith.constant 0 : i32
    %c0_i32_1 = arith.constant 0 : i32
    return %arg0, %c0_i32, %c0_i32_0 : i32, i32, i32
  }
  func.func @transform_1(%arg0: i32) -> (i32, i32, i32) {
    %c0_i32 = arith.constant 0 : i32
    %c0_i32_0 = arith.constant 0 : i32
    %c0_i32_1 = arith.constant 0 : i32
    %c0_i32_2 = arith.constant 0 : i32
    return %c0_i32, %c0_i32_0, %c0_i32_1 : i32, i32, i32
  }
  func.func @transform_2(%arg0: i32) -> (i32, i32) {
    %c0_i32 = arith.constant 0 : i32
    %c0_i32_0 = arith.constant 0 : i32
    %c0_i32_1 = arith.constant 0 : i32
    return %c0_i32, %c0_i32_0 : i32, i32
  }
  func.func @transform_3(%arg0: i32) -> (i32, i32) {
    %c0_i32 = arith.constant 0 : i32
    %c0_i32_0 = arith.constant 0 : i32
    %c0_i32_1 = arith.constant 0 : i32
    return %c0_i32, %c0_i32_0 : i32, i32
  }
  func.func @transform_4(%arg0: i32) -> (i32, i32, i32) {
    %c0_i32 = arith.constant 0 : i32
    %c0_i32_0 = arith.constant 0 : i32
    %c0_i32_1 = arith.constant 0 : i32
    %c0_i32_2 = arith.constant 0 : i32
    return %c0_i32, %c0_i32_0, %c0_i32_1 : i32, i32, i32
  }
  func.func @transform_5(%arg0: i32) -> (i32, i32) {
    %c0_i32 = arith.constant 0 : i32
    %c0_i32_0 = arith.constant 0 : i32
    %c0_i32_1 = arith.constant 0 : i32
    return %c0_i32, %c0_i32_0 : i32, i32
  }
  func.func @transform_6(%arg0: i32) -> (i32, i32) {
    %c0_i32 = arith.constant 0 : i32
    %c0_i32_0 = arith.constant 0 : i32
    %c0_i32_1 = arith.constant 0 : i32
    return %c0_i32, %c0_i32_0 : i32, i32
  }
  func.func @transform_7(%arg0: i32) -> (i32, i32, i32) {
    %c0_i32 = arith.constant 0 : i32
    %c0_i32_0 = arith.constant 0 : i32
    %c0_i32_1 = arith.constant 0 : i32
    return %arg0, %c0_i32, %c0_i32_0 : i32, i32, i32
  }
}

</mosaic_0001>

<bundles_post_ra>
// kernel: tpu_custom_call.1
= control target key start
LH: loop header
LB: loop body
LE: loop exit
PB: predicated region body
PF: predicated region fallthrough
CT: control target
= control target key end

     0   :  { %12 = vsyncpa [#allocation5], 0  ;;  %s2370_s0 = inlined_call_operand.hbm [shape: f32[2,8,256], index: 0, kind: input, shape index: {}]   ;;  %s2371_s1 = inlined_call_operand.hbm [shape: f32[3,256,256], index: 1, kind: input, shape index: {}]   ;;  %s2372_s2 = inlined_call_operand.vmem [shape: f32[1,256], index: 2, kind: input, shape index: {}]   ;;  %s2373_s3 = inlined_call_operand.vmem [shape: f32[1,256], index: 3, kind: input, shape index: {}]   ;;  %s2374_s4 = inlined_call_operand.hbm [shape: f32[3,256,256], index: 4, kind: input, shape index: {}]   ;;  %s2375_s5 = inlined_call_operand.vmem [shape: f32[1,256], index: 5, kind: input, shape index: {}]   ;;  %s2376_s6 = inlined_call_operand.vmem [shape: f32[1,256], index: 6, kind: input, shape index: {}]   ;;  %s2377_s7 = inlined_call_operand.hbm [shape: f32[2,8,256], index: 7, kind: output, shape index: {}]  }
   0x1   :  { %14 = vsyncpa [#allocation5 + $0x1], 0 }
   0x2   :  { %15 = vsyncpa [#allocation8], 0 }
   0x3   :  { %16 = vsyncpa [#allocation6], 0 }
   0x4   :  { %18 = vsyncpa [#allocation6 + $0x1], 0  ;;  %s2099_s24 = smov 0   ;;  %s2101_s25 = smov 0  }
   0x5   :  { %s2103_s26 = smov 0   ;;  %s2105_s27 = smov 0  }
   0x6 LB: > { %s2120_s28 = sadd.s32 4294967295, %s2050_s27   ;;  %s1410_s29 = sadd.s32 4294967294, %s2050_s27   ;;  %s2050_s27 = sphi %s2105_s27, %s2397_s27   ;;  %s2046_s26 = sphi %s2103_s26, %s2396_s26   ;;  %s2042_s25 = sphi %s2101_s25, %s2395_s25   ;;  %s2038_s24 = sphi %s2099_s24, %s2394_s24  }
   0x7   : > { %p44_p0 = scmp.ne.s32.totalorder %s2042_s25, %s2038_s24  ;;  %p2378_p1 = scmp.eq.s32.totalorder %s2120_s28, 0 }
   0x8   : > { %p200_p3 = scmp.eq.s32.totalorder %s1410_s29, 1  ;;  %p1411_p5 = scmp.ge.s32.totalorder %s2050_s27, 1 }
   0x9   : > { %p2129_p4 = por %p2378_p1, %p44_p0  ;;  %p207_p7 = scmp.lt.s32.totalorder %s2050_s27, 3 }
   0xa   : > { %p2134_p6 = por %p200_p3, %p44_p0  ;;  %s2052_s10 = smov [#allocation7]  }
   0xb   : > { %s2381_s30 = scalar_select %p2129_p4, 1, 0 }
   0xc   : > { %s2382_s8 = scalar_select %p2134_p6, 1, 0 }
   0xd   : > { %p2139_p8 = pnand %p1411_p5, %p207_p7  ;;  %s219_s11 = sshll.u32 %s2052_s10, 4  ;;  %s2143_s11 = int_to_ptr.vmem [resolvable:$true] %s219_s11 }
   0xe   : > { %s2053_s13 = smov [#allocation9]   ;;  %s1894_s17 = scalar_lea.hbm %s2371_s1, 24576 }
   0xf   : > { %p1834_p9 = pneg %p2139_p8  ;;  %s238_s14 = sshll.u32 %s2053_s13, 4  ;;  %s2154_s14 = int_to_ptr.vmem [resolvable:$true] %s238_s14 }
  0x10   : > { %p1895_p12 = scmp.ne.s32.totalorder %s2371_s1, %s1894_s17  ;;  %p1901_p5 = scmp.lt.u32.totalorder %s1894_s17, %s2371_s1 }
  0x11   : > { %p2150_p11 = pnand %p1834_p9, %p2378_p1 }
  0x13   : > { %p1896_p13 = pneg %p2150_p11 }
  0x15   : > { %p1897_p0 = pnand %p1896_p13, %p1895_p12 }
  0x17   : > { %p1898_p3 = pneg %p1897_p0 }
  0x19   : > { %p1903_p7 = pnand %p1901_p5, %p1898_p3 }
  0x1b   : > { %1906 = shalt.err (!%p1903_p7)
}
  0x1c   : > { %s1907_s22 = scalar_lea.vmem %s2143_s11, 24576  ;;  %p1915_p2 = scmp.lt.s32.totalorder %s2143_s11, %s2143_s11 }
  0x1d   : > { %p1908_p9 = scmp.ne.s32.totalorder %s2143_s11, %s1907_s22  ;;  %p1916_p12 = scmp.lt.s32.totalorder %s1907_s22, %s1907_s22 }
  0x1f   : > { %p1910_p10 = pnand %p1908_p9, %p1896_p13  ;;  %p1917_p0 = por %p1916_p12, %p1915_p2 }
  0x21   : > { %p1911_p1 = pneg %p1910_p10 }
  0x23   : > { %p1918_p6 = pnand %p1917_p0, %p1911_p1 }
  0x25   : > { %1921 = shalt.err (!%p1918_p6)
}
  0x26   : > { %s2054_s23 = smov 256   ;;  %s2055_s29 = smov 16  }
  0x27   : > { %1837 = dma.hbm_to_vmem [thread:$0]  (!%p2150_p11), %s2371_s1, 24576, %s2143_s11, [#allocation8], %s2054_s23, %s2054_s23, %s2055_s29  }
  0x28   : > { %s1922_s17 = scalar_lea.hbm %s2374_s4, 24576 }
  0x29   : > { %p1923_p2 = scmp.ne.s32.totalorder %s2374_s4, %s1922_s17  ;;  %p1929_p10 = scmp.lt.u32.totalorder %s1922_s17, %s2374_s4 }
  0x2b   : > { %p1925_p1 = pnand %p1923_p2, %p1896_p13 }
  0x2d   : > { %p1926_p6 = pneg %p1925_p1 }
  0x2f   : > { %p1931_p3 = pnand %p1929_p10, %p1926_p6 }
  0x31   : > { %1934 = shalt.err (!%p1931_p3)
}
  0x32   : > { %s1935_s11 = scalar_lea.vmem %s2154_s14, 24576  ;;  %p1943_p12 = scmp.lt.s32.totalorder %s2154_s14, %s2154_s14 }
  0x33   : > { %p1936_p5 = scmp.ne.s32.totalorder %s2154_s14, %s1935_s11  ;;  %p1944_p0 = scmp.lt.s32.totalorder %s1935_s11, %s1935_s11 }
  0x35   : > { %p1938_p7 = pnand %p1936_p5, %p1896_p13  ;;  %p1945_p2 = por %p1944_p0, %p1943_p12 }
  0x37   : > { %p1939_p9 = pneg %p1938_p7 }
  0x39   : > { %p1946_p1 = pnand %p1945_p2, %p1939_p9 }
  0x3b   : > { %1949 = shalt.err (!%p1946_p1)
}
  0x3c   : > { %1840 = dma.hbm_to_vmem [thread:$0]  (!%p2150_p11), %s2374_s4, 24576, %s2154_s14, [#allocation8], %s2054_s23, %s2054_s23, %s2055_s29  }
  0x3d   : > { %s2209_s13 = sadd.s32 1, %s2050_s27   ;;  %s31_s12 = sadd.s32 1, %s2046_s26 }
  0x3e   : > { %s28_s15 = ssub.s32 %s2050_s27, %s2209_s13  ;;  %p38_p13 = scmp.ne.s32.totalorder %s2046_s26, %s2042_s25 }
  0x3f   : > { %p29_p6 = scmp.eq.s32.totalorder %s28_s15, 0  ;;  %p39_p10 = scmp.eq.s32.totalorder %s2050_s27, 0 }
  0x40   : > { %p2385_p3 = scmp.eq.s32.totalorder %s2120_s28, 1  ;;  %p1851_p7 = scmp.lt.s32.totalorder %s2050_s27, 2 }
  0x41   : > { %s2225_s17 = scalar_select %p29_p6, %s2046_s26, %s31_s12  }
  0x42   : > { %p2219_p5 = por %p2385_p3, %p38_p13  ;;  %p40_p9 = por %p39_p10, %p38_p13 }
  0x43   : > { %s258_s18 = sand.u32 1, %s2046_s26   ;;  %s1428_s14 = sshll.u32 %s2050_s27, 8 }
  0x44   : > { %s2386_s16 = scalar_select %p2219_p5, 1, 0 }
  0x45   : > { %s1415_s19 = sshll.u32 %s258_s18, 4  ;;  %s2232_s20 = scalar_lea.hbm %s2370_s0, %s1428_s14 }
  0x46   : > { %s262_s21 = scalar_lea.vmem [#allocation4], %s1415_s19  ;;  %p2236_p11 = pnand %p1851_p7, %p40_p9 }
  0x47   : > { %s270_s11 = sshll.u32 %s262_s21, 4  ;;  %s259_s10 = scalar_lea.sflag [#allocation5], %s258_s18  ;;  %s2234_s11 = int_to_ptr.vmem [resolvable:$true] %s270_s11 }
  0x48   : > { %s1950_s12 = scalar_lea.hbm %s2232_s20, 256  ;;  %p1952_p0 = pneg %p2236_p11 }
  0x49   : > { %p1951_p12 = scmp.ne.s32.totalorder %s2232_s20, %s1950_s12  ;;  %s1955_s14 = scalar_lea.hbm %s2370_s0, 512 }
  0x4a   : > { %p1956_p13 = scmp.lt.u32.totalorder %s2232_s20, %s2370_s0  ;;  %p1957_p6 = scmp.lt.u32.totalorder %s1955_s14, %s1950_s12 }
  0x4b   : > { %p1953_p2 = pnand %p1952_p0, %p1951_p12  ;;  %p1959_p3 = scmp.lt.u32.totalorder %s1950_s12, %s2232_s20 }
  0x4c   : > { %p1958_p10 = por %p1957_p6, %p1956_p13 }
  0x4d   : > { %p1954_p1 = pneg %p1953_p2 }
  0x4e   : > { %p1960_p7 = por %p1959_p3, %p1958_p10 }
  0x50   : > { %p1961_p9 = pnand %p1960_p7, %p1954_p1 }
  0x52   : > { %1964 = shalt.err (!%p1961_p9)
}
  0x53   : > { %s1965_s18 = scalar_lea.vmem %s2234_s11, 256  ;;  %s2056_s21 = smov [#allocation4]  }
  0x54   : > { %p1966_p12 = scmp.ne.s32.totalorder %s2234_s11, %s1965_s18  ;;  %s1970_s15 = sshll.u32 %s2056_s21, 4  ;;  %s1971_s15 = int_to_ptr.vmem [resolvable:$false] %s1970_s15 }
  0x55   : > { %s1972_s19 = scalar_lea.vmem %s1971_s15, 512  ;;  %p1973_p4 = scmp.lt.s32.totalorder %s2234_s11, %s1971_s15 }
  0x56   : > { %p1968_p2 = pnand %p1966_p12, %p1952_p0  ;;  %p1974_p13 = scmp.lt.s32.totalorder %s1972_s19, %s1965_s18 }
  0x58   : > { %p1969_p5 = pneg %p1968_p2  ;;  %p1975_p6 = por %p1974_p13, %p1973_p4 }
  0x5a   : > { %p1976_p10 = pnand %p1975_p6, %p1969_p5 }
  0x5c   : > { %1979 = shalt.err (!%p1976_p10)
}
  0x5d   : > { %1844 = dma.hbm_to_vmem [thread:$0]  (!%p2236_p11), %s2232_s20, 256, %s2234_s11, %s259_s10  }
  0x5e   : > { %279 = sbr.rel (%p2139_p8) target bundleno = 896 (0x380), region = 48  ;;  %s2268_s12 = sand.u32 (!%p2139_p8), 1, %s2042_s25  }
  0x5f   : > { %s1419_s14 = sshll.u32 (!%p2139_p8), %s2268_s12, 4  ;;  %s282_s23 = scalar_lea.sflag (!%p2139_p8), [#allocation5], %s2268_s12 }
  0x60   : > { %s2274_s29 = scalar_lea.vmem (!%p2139_p8), [#allocation4], %s1419_s14  ;;  %p2388_p4 = scmp.ne.s32.totalorder (!%p2139_p8), %s2381_s30, 0 }
  0x65   : > { %2025 = dma.done.wait (%p2388_p4), %s282_s23, 256  }
  0x66   : > { %2027 = vsyncadd (%p2388_p4), %s282_s23, 4294967040  ;;  %p2389_p5 = scmp.eq.s32.totalorder %s2120_s28, 0 }
  0x68   : > { %2029 = dma.done.wait (%p2389_p5), [#allocation8], 49152   ;;  %p2390_p8 = pmov %p2389_p5 }
  0x69   : > { %v2057_v0 = vmov 0.0   ;;  %v412_v1 = vld [vmem:[#allocation7 + $0x208] sm:$0xff]  ;;  %v414_v2 = vld [vmem:[#allocation7 + $0x218] sm:$0xff]  ;;  %v411_v3 = vld [vmem:[#allocation7 + $0x200] sm:$0xff]  ;;  %vm479_vm0 = vcmask 1046528   ;;  %vm703_vm1 = vcmask 1045504  }
  0x6a   : > { %2031 = vsyncadd (%p2390_p8), [#allocation8], 4294918144  ;;  %327 = vst [vmem:[#allocation2 + $0x8] sm:$0xff] %v2057_v0  ;;  %v1430_v4 = vpack.c.bf16 %v414_v2, %v412_v1  ;;  %v413_v5 = vld [vmem:[#allocation7 + $0x210] sm:$0xff]  ;;  %v416_v6 = vld [vmem:[#allocation7 + $0x228] sm:$0xff]  ;;  %s1429_s15 = sshll.u32 %s2120_s28, 8 }
  0x6b   : > { %329 = vst [vmem:[#allocation2 + $0x18] sm:$0x3] %v2057_v0  ;;  %326 = vst [vmem:[#allocation2] sm:$0xff] %v2057_v0  ;;  %v418_v7 = vld [vmem:[#allocation7 + $0x238] sm:$0xff]  ;;  %v1432_v8 = vpack.c.bf16 %v413_v5, %v411_v3  ;;  %v415_v10 = vld [vmem:[#allocation7 + $0x220] sm:$0xff]  ;;  %s323_s19 = scalar_lea.vmem [#allocation10], %s1419_s14  ;;  %s2326_s20 = scalar_lea.hbm %s2377_s7, %s1429_s15 }
  0x6c   : > { %328 = vst [vmem:[#allocation2 + $0x10] sm:$0x3] %v2057_v0  ;;  %815 = vst [vmem:[#allocation3] sm:$0xff] %v2057_v0  ;;  %v1434_v9 = vpack.c.bf16 %v418_v7, %v416_v6  ;;  %v417_v11 = vld [vmem:[#allocation7 + $0x230] sm:$0xff]  ;;  %v420_v12 = vld [vmem:[#allocation7 + $0x248] sm:$0xff]  ;;  %1431 = vmatprep.subr.bf16.mxu0 %v1430_v4  ;;  %s1321_s23 = sshll.u32 %s323_s19, 4  ;;  %s2328_s23 = int_to_ptr.vmem [resolvable:$true] %s1321_s23 }
  0x6d   : > { %816 = vst [vmem:[#allocation3 + $0x8] sm:$0xff] %v2057_v0  ;;  %817 = vst [vmem:[#allocation3 + $0x10] sm:$0x3] %v2057_v0  ;;  %v422_v13 = vld [vmem:[#allocation7 + $0x258] sm:$0xff]  ;;  %1433 = vmatpush1.bf16.msra.mxu0 %v1432_v8  ;;  %v1436_v14 = vpack.c.bf16 %v417_v11, %v415_v10  ;;  %v419_v16 = vld [vmem:[#allocation7 + $0x240] sm:$0xff]  ;;  %s1307_s28 = scalar_lea.sflag [#allocation6], %s2268_s12 }
  0x6e   : > { %818 = vst [vmem:[#allocation3 + $0x18] sm:$0x3] %v2057_v0  ;;  %1435 = vmatprep.subr.bf16.mxu0 %v1434_v9  ;;  %v1438_v15 = vpack.c.bf16 %v422_v13, %v420_v12  ;;  %v421_v17 = vld [vmem:[#allocation7 + $0x250] sm:$0xff]  ;;  %v424_v18 = vld [vmem:[#allocation7 + $0x268] sm:$0xff]  ;;  %v426_v19 = vld [vmem:[#allocation7 + $0x278] sm:$0xff]  ;;  %s1980_s11 = scalar_lea.vmem %s2328_s23, 256 }
  0x6f   : > { %v1440_v20 = vpack.c.bf16 %v421_v17, %v419_v16  ;;  %v1442_v21 = vpack.c.bf16 %v426_v19, %v424_v18  ;;  %v423_v22 = vld [vmem:[#allocation7 + $0x260] sm:$0xff]  ;;  %v425_v23 = vld [vmem:[#allocation7 + $0x270] sm:$0xff]  ;;  %v428_v24 = vld [vmem:[#allocation7 + $0x288] sm:$0xff]  ;;  %p1981_p11 = scmp.ne.s32.totalorder %s2328_s23, %s1980_s11  ;;  %p2391_p0 = scmp.ne.s32.totalorder %s2386_s16, 0 }
  0x70   : > { %v430_v25 = vld [vmem:[#allocation7 + $0x298] sm:$0xff]  ;;  %v1444_v26 = vpack.c.bf16 %v425_v23, %v423_v22  ;;  %v427_v28 = vld [vmem:[#allocation7 + $0x280] sm:$0xff]  ;;  %v429_v29 = vld [vmem:[#allocation7 + $0x290] sm:$0xff]  ;;  %s2058_s14 = smov [#allocation10]  }
  0x71   : > { %1437 = vmatpush1.bf16.msra.mxu0 %v1436_v14  ;;  %v1446_v27 = vpack.c.bf16 %v430_v25, %v428_v24  ;;  %v432_v30 = vld [vmem:[#allocation7 + $0x2a8] sm:$0xff]  ;;  %v434_v31 = vld [vmem:[#allocation7 + $0x2b8] sm:$0xff]  ;;  %v1448_v32 = vpack.c.bf16 %v429_v29, %v427_v28  ;;  %v431_v34 = vld [vmem:[#allocation7 + $0x2a0] sm:$0xff]  ;;  %p1982_p1 = pnand %p1981_p11, %p2391_p0 }
  0x72   : > { %1439 = vmatprep.subr.bf16.mxu0 %v1438_v15  ;;  %v1450_v33 = vpack.c.bf16 %v434_v31, %v432_v30  ;;  %v433_v35 = vld [vmem:[#allocation7 + $0x2b0] sm:$0xff]  ;;  %v436_v36 = vld [vmem:[#allocation7 + $0x2c8] sm:$0xff]  ;;  %v438_v37 = vld [vmem:[#allocation7 + $0x2d8] sm:$0xff] }
  0x73   : > { %v1452_v38 = vpack.c.bf16 %v433_v35, %v431_v34  ;;  %v1454_v39 = vpack.c.bf16 %v438_v37, %v436_v36  ;;  %v435_v40 = vld [vmem:[#allocation7 + $0x2c0] sm:$0xff]  ;;  %v437_v41 = vld [vmem:[#allocation7 + $0x2d0] sm:$0xff]  ;;  %v325_v42 = vld [vmem:[%s2274_s29 + $0x8] sm:$0xff]  ;;  %p1983_p3 = pneg %p1982_p1 }
  0x74   : > { %v440_v43 = vld [vmem:[#allocation7 + $0x2e8] sm:$0xff]  ;;  %v442_v44 = vld [vmem:[#allocation7 + $0x2f8] sm:$0xff]  ;;  %v333_v45 = vrot.slane %v325_v42, 7  ;;  %v324_v46 = vld [vmem:[%s2274_s29] sm:$0xff]  ;;  %v1456_v48 = vpack.c.bf16 %v437_v41, %v435_v40 }
  0x75   : > { %1441 = vmatpush1.bf16.msra.mxu0 %v1440_v20  ;;  %v332_v47 = vrot.slane %v324_v46, 7  ;;  %v1458_v49 = vpack.c.bf16 %v442_v44, %v440_v43  ;;  %v439_v50 = vld [vmem:[#allocation7 + $0x2e0] sm:$0xff]  ;;  %v441_v51 = vld [vmem:[#allocation7 + $0x2f0] sm:$0xff]  ;;  %v444_v52 = vld [vmem:[#allocation7 + $0x308] sm:$0xff] }
  0x76   : > { %1443 = vmatprep.subr.bf16.mxu0 %v1442_v21  ;;  %337 = vst [vmem:[#allocation2 + $0x8] sm:$0xfe] %v333_v45  ;;  %339 = vst [vmem:[#allocation2 + $0x18] sm:$0x1] %v333_v45  ;;  %v446_v53 = vld [vmem:[#allocation7 + $0x318] sm:$0xff]  ;;  %v1460_v54 = vpack.c.bf16 %v441_v51, %v439_v50  ;;  %v443_v56 = vld [vmem:[#allocation7 + $0x300] sm:$0xff] }
  0x77   : > { %336 = vst [vmem:[#allocation2] sm:$0xfe] %v332_v47  ;;  %338 = vst [vmem:[#allocation2 + $0x10] sm:$0x1] %v332_v47  ;;  %v1462_v55 = vpack.c.bf16 %v446_v53, %v444_v52  ;;  %v445_v57 = vld [vmem:[#allocation7 + $0x310] sm:$0xff]  ;;  %v448_v58 = vld [vmem:[#allocation7 + $0x328] sm:$0xff] }
  0x78   : > { %v450_v59 = vld [vmem:[#allocation7 + $0x338] sm:$0xff]  ;;  %v1464_v62 = vpack.c.bf16 %v445_v57, %v443_v56  ;;  %v447_v2 = vld [vmem:[#allocation7 + $0x320] sm:$0xff]  ;;  %v449_v3 = vld [vmem:[#allocation7 + $0x330] sm:$0xff] }
  0x79   : > { %1445 = vmatpush1.bf16.msra.mxu0 %v1444_v26  ;;  %v1466_v1 = vpack.c.bf16 %v450_v59, %v448_v58  ;;  %v452_v4 = vld [vmem:[#allocation7 + $0x348] sm:$0xff]  ;;  %v454_v5 = vld [vmem:[#allocation7 + $0x358] sm:$0xff]  ;;  %v1468_v7 = vpack.c.bf16 %v449_v3, %v447_v2  ;;  %v451_v9 = vld [vmem:[#allocation7 + $0x340] sm:$0xff] }
  0x7a   : > { %1447 = vmatprep.subr.bf16.mxu0 %v1446_v27  ;;  %v1470_v8 = vpack.c.bf16 %v454_v5, %v452_v4  ;;  %v453_v10 = vld [vmem:[#allocation7 + $0x350] sm:$0xff]  ;;  %v456_v11 = vld [vmem:[#allocation7 + $0x368] sm:$0xff]  ;;  %v458_v12 = vld [vmem:[#allocation7 + $0x378] sm:$0xff] }
  0x7b   : > { %v1472_v13 = vpack.c.bf16 %v453_v10, %v451_v9  ;;  %v1474_v14 = vpack.c.bf16 %v458_v12, %v456_v11  ;;  %v455_v15 = vld [vmem:[#allocation7 + $0x360] sm:$0xff]  ;;  %v457_v16 = vld [vmem:[#allocation7 + $0x370] sm:$0xff]  ;;  %v460_v17 = vld [vmem:[#allocation7 + $0x388] sm:$0xff] }
  0x7c   : > { %v462_v18 = vld [vmem:[#allocation7 + $0x398] sm:$0xff]  ;;  %v1476_v19 = vpack.c.bf16 %v457_v16, %v455_v15  ;;  %v459_v21 = vld [vmem:[#allocation7 + $0x380] sm:$0xff]  ;;  %v461_v22 = vld [vmem:[#allocation7 + $0x390] sm:$0xff] }
  0x7d   : > { %1449 = vmatpush1.bf16.msra.mxu0 %v1448_v32  ;;  %v407_v60 = vld [vmem:[#allocation2 + $0x8] sm:$0xfe]  ;;  %v409_v61 = vld [vmem:[#allocation2 + $0x18] sm:$0x1]  ;;  %v1478_v20 = vpack.c.bf16 %v462_v18, %v460_v17  ;;  %v1480_v25 = vpack.c.bf16 %v461_v22, %v459_v21  ;;  %v463_v27 = vld [vmem:[#allocation7 + $0x3a0] sm:$0xff] }
  0x7e   : > { %1451 = vmatprep.subr.bf16.mxu0 %v1450_v33  ;;  %v483_v63 = vrot.slane %v407_v60, 1  ;;  %v484_v0 = vrot.slane %v409_v61, 1  ;;  %v464_v23 = vld [vmem:[#allocation7 + $0x3a8] sm:$0xff]  ;;  %v466_v24 = vld [vmem:[#allocation7 + $0x3b8] sm:$0xff]  ;;  %v465_v28 = vld [vmem:[#allocation7 + $0x3b0] sm:$0xff] }
  0x7f   : > { %v1482_v26 = vpack.c.bf16 %v466_v24, %v464_v23  ;;  %v468_v29 = vld [vmem:[#allocation7 + $0x3c8] sm:$0xff]  ;;  %v470_v30 = vld [vmem:[#allocation7 + $0x3d8] sm:$0xff]  ;;  %v1484_v31 = vpack.c.bf16 %v465_v28, %v463_v27  ;;  %v467_v33 = vld [vmem:[#allocation7 + $0x3c0] sm:$0xff] }
  0x80   : > { %v485_v6 = vsel %vm479_vm0, %v483_v63, %v484_v0  ;;  %v1486_v32 = vpack.c.bf16 %v470_v30, %v468_v29  ;;  %v469_v34 = vld [vmem:[#allocation7 + $0x3d0] sm:$0xff]  ;;  %v472_v35 = vld [vmem:[#allocation7 + $0x3e8] sm:$0xff]  ;;  %v474_v36 = vld [vmem:[#allocation7 + $0x3f8] sm:$0xff] }
  0x81   : > { %1453 = vmatpush1.bf16.msra.mxu0 %v1452_v38  ;;  %552 = vmatprep.mubr.f32.mxu0 %v485_v6  ;;  %v1488_v37 = vpack.c.bf16 %v469_v34, %v467_v33  ;;  %v471_v38 = vld [vmem:[#allocation7 + $0x3e0] sm:$0xff]  ;;  %v473_v40 = vld [vmem:[#allocation7 + $0x3f0] sm:$0xff]  ;;  %v343_v43 = vld [vmem:[#allocation7 + $0x8] sm:$0xff] }
  0x82   : > { %1455 = vmatprep.subr.bf16.mxu0 %v1454_v39  ;;  %v1490_v39 = vpack.c.bf16 %v474_v36, %v472_v35  ;;  %v406_v41 = vld [vmem:[#allocation2] sm:$0xfe]  ;;  %v408_v42 = vld [vmem:[#allocation2 + $0x10] sm:$0x1]  ;;  %v345_v44 = vld [vmem:[#allocation7 + $0x18] sm:$0xff]  ;;  %v1492_v45 = vpack.c.bf16 %v473_v40, %v471_v38 }
  0x83   : > { %v480_v46 = vrot.slane %v406_v41, 1  ;;  %v481_v47 = vrot.slane %v408_v42, 1  ;;  %v344_v50 = vld [vmem:[#allocation7 + $0x10] sm:$0xff]  ;;  %v347_v51 = vld [vmem:[#allocation7 + $0x28] sm:$0xff]  ;;  %v349_v52 = vld [vmem:[#allocation7 + $0x38] sm:$0xff] }
  0x84   : > { %v346_v56 = vld [vmem:[#allocation7 + $0x20] sm:$0xff]  ;;  %v348_v57 = vld [vmem:[#allocation7 + $0x30] sm:$0xff]  ;;  %v341_v58 = vld [vmem:[#allocation2 + $0x8] sm:$0xff] }
  0x85   : > { %1457 = vmatpush1.bf16.msra.mxu0 %v1456_v48  ;;  %v1494_v48 = vpack.c.bf16 %v345_v44, %v343_v43  ;;  %v482_v53 = vsel %vm479_vm0, %v480_v46, %v481_v47  ;;  %v351_v59 = vld [vmem:[#allocation7 + $0x48] sm:$0xff]  ;;  %v353_v60 = vld [vmem:[#allocation7 + $0x58] sm:$0xff]  ;;  %v350_v61 = vld [vmem:[#allocation7 + $0x40] sm:$0xff]  ;;  %v1500_v63 = vpack.c.bf16 %v348_v57, %v346_v56 }
  0x86   : > { %1459 = vmatprep.subr.bf16.mxu0 %v1458_v49  ;;  %v342_v49 = vld [vmem:[#allocation7] sm:$0xff]  ;;  %v355_v0 = vld [vmem:[#allocation7 + $0x68] sm:$0xff]  ;;  %v1502_v3 = vpack.c.bf16 %v353_v60, %v351_v59  ;;  %v903_v4 = vld [vmem:[#allocation9 + $0x218] sm:$0xff] }
  0x87   : > { %v901_v2 = vld [vmem:[#allocation9 + $0x208] sm:$0xff]  ;;  %v900_v5 = vld [vmem:[#allocation9 + $0x200] sm:$0xff]  ;;  %v902_v6 = vld [vmem:[#allocation9 + $0x210] sm:$0xff] }
  0x88   : > { %v905_v9 = vld [vmem:[#allocation9 + $0x228] sm:$0xff]  ;;  %v907_v10 = vld [vmem:[#allocation9 + $0x238] sm:$0xff]  ;;  %v904_v11 = vld [vmem:[#allocation9 + $0x220] sm:$0xff] }
  0x89   : > { %1461 = vmatpush1.bf16.msra.mxu0 %v1460_v54  ;;  %v1496_v54 = vpack.c.bf16 %v344_v50, %v342_v49  ;;  %v1626_v12 = vpack.c.bf16 %v907_v10, %v905_v9  ;;  %v911_v15 = vld [vmem:[#allocation9 + $0x258] sm:$0xff]  ;;  %v354_v18 = vld [vmem:[#allocation7 + $0x60] sm:$0xff]  ;;  %v917_v38 = vld [vmem:[#allocation9 + $0x288] sm:$0xff] }
  0x8a   : > { %1463 = vmatprep.subr.bf16.mxu0 %v1462_v55  ;;  %v1498_v55 = vpack.c.bf16 %v349_v52, %v347_v51  ;;  %v361_v22 = vld [vmem:[#allocation7 + $0x98] sm:$0xff]  ;;  %v908_v24 = vld [vmem:[#allocation9 + $0x240] sm:$0xff]  ;;  %v364_v43 = vld [vmem:[#allocation7 + $0xb0] sm:$0xff] }
  0x8b   : > { %v915_v27 = vld [vmem:[#allocation9 + $0x278] sm:$0xff]  ;;  %v358_v30 = vld [vmem:[#allocation7 + $0x80] sm:$0xff]  ;;  %v367_v44 = vld [vmem:[#allocation7 + $0xc8] sm:$0xff] }
  0x8c   : > { %v365_v34 = vld [vmem:[#allocation7 + $0xb8] sm:$0xff]  ;;  %v912_v36 = vld [vmem:[#allocation9 + $0x260] sm:$0xff]  ;;  %v918_v49 = vld [vmem:[#allocation9 + $0x290] sm:$0xff] }
  0x8d   : > { %1465 = vmatpush1.bf16.msra.mxu0 %v1464_v62  ;;  %v352_v62 = vld [vmem:[#allocation7 + $0x50] sm:$0xff]  ;;  %v362_v42 = vld [vmem:[#allocation7 + $0xa0] sm:$0xff]  ;;  %v369_v46 = vld [vmem:[#allocation7 + $0xd8] sm:$0xff] }
  0x8e   : > { %1467 = vmatprep.subr.bf16.mxu0 %v1466_v1  ;;  %v357_v1 = vld [vmem:[#allocation7 + $0x78] sm:$0xff]  ;;  %v1504_v16 = vpack.c.bf16 %v352_v62, %v350_v61  ;;  %v921_v50 = vld [vmem:[#allocation9 + $0x2a8] sm:$0xff]  ;;  %v1516_v52 = vpack.c.bf16 %v364_v43, %v362_v42  ;;  %v920_v60 = vld [vmem:[#allocation9 + $0x2a0] sm:$0xff] }
  0x8f   : > { %v1506_v17 = vpack.c.bf16 %v357_v1, %v355_v0  ;;  %v923_v51 = vld [vmem:[#allocation9 + $0x2b8] sm:$0xff]  ;;  %v371_v56 = vld [vmem:[#allocation7 + $0xe8] sm:$0xff]  ;;  %v922_v61 = vld [vmem:[#allocation9 + $0x2b0] sm:$0xff] }
  0x90   : > { %v1642_v59 = vpack.c.bf16 %v923_v51, %v921_v50  ;;  %v925_v62 = vld [vmem:[#allocation9 + $0x2c8] sm:$0xff]  ;;  %v926_v9 = vld [vmem:[#allocation9 + $0x2d0] sm:$0xff]  ;;  %v389_v42 = vld [vmem:[#allocation7 + $0x178] sm:$0xff] }
  0x91   : > { %1469 = vmatpush1.bf16.msra.mxu0 %v1468_v7  ;;  %v1622_v7 = vpack.c.bf16 %v903_v4, %v901_v2  ;;  %v370_v2 = vld [vmem:[#allocation7 + $0xe0] sm:$0xff]  ;;  %v375_v4 = vld [vmem:[#allocation7 + $0x108] sm:$0xff]  ;;  %v388_v51 = vld [vmem:[#allocation7 + $0x170] sm:$0xff] }
  0x92   : > { %1471 = vmatprep.subr.bf16.mxu0 %v1470_v8  ;;  %v1624_v8 = vpack.c.bf16 %v902_v6, %v900_v5  ;;  %v1644_v5 = vpack.c.bf16 %v922_v61, %v920_v60  ;;  %v377_v6 = vld [vmem:[#allocation7 + $0x118] sm:$0xff]  ;;  %v929_v10 = vld [vmem:[#allocation9 + $0x2e8] sm:$0xff]  ;;  %v386_v50 = vld [vmem:[#allocation7 + $0x160] sm:$0xff] }
  0x93   : > { %1623 = vmatprep.subr.bf16.mxu1 %v1622_v7  ;;  %v390_v60 = vld [vmem:[#allocation7 + $0x180] sm:$0xff]  ;;  %v392_v61 = vld [vmem:[#allocation7 + $0x190] sm:$0xff] }
  0x94   : > { %1625 = vmatpush1.bf16.msra.mxu1 %v1624_v8  ;;  %v924_v8 = vld [vmem:[#allocation9 + $0x2c0] sm:$0xff] }
  0x95   : > { %1473 = vmatpush1.bf16.msra.mxu0 %v1472_v13  ;;  %v906_v13 = vld [vmem:[#allocation9 + $0x230] sm:$0xff]  ;;  %1627 = vmatprep.subr.bf16.mxu1 %v1626_v12 }
  0x96   : > { %1475 = vmatprep.subr.bf16.mxu0 %v1474_v14  ;;  %v909_v14 = vld [vmem:[#allocation9 + $0x248] sm:$0xff]  ;;  %v1628_v21 = vpack.c.bf16 %v906_v13, %v904_v11  ;;  %v931_v11 = vld [vmem:[#allocation9 + $0x2f8] sm:$0xff]  ;;  %v1526_v13 = vpack.c.bf16 %v377_v6, %v375_v4  ;;  %v396_v4 = vld [vmem:[#allocation7 + $0x1b0] sm:$0xff] }
  0x97   : > { %v1630_v23 = vpack.c.bf16 %v911_v15, %v909_v14  ;;  %v374_v14 = vld [vmem:[#allocation7 + $0x100] sm:$0xff]  ;;  %v376_v15 = vld [vmem:[#allocation7 + $0x110] sm:$0xff]  ;;  %v401_v6 = vld [vmem:[#allocation7 + $0x1d8] sm:$0xff] }
  0x98   : > { %1629 = vmatpush1.bf16.msra.mxu1 %v1628_v21  ;;  %v930_v21 = vld [vmem:[#allocation9 + $0x2f0] sm:$0xff] }
  0x99   : > { %1477 = vmatpush1.bf16.msra.mxu0 %v1476_v19  ;;  %v356_v19 = vld [vmem:[#allocation7 + $0x70] sm:$0xff]  ;;  %1631 = vmatprep.subr.bf16.mxu1 %v1630_v23  ;;  %v935_v23 = vld [vmem:[#allocation9 + $0x318] sm:$0xff] }
  0x9a   : > { %1479 = vmatprep.subr.bf16.mxu0 %v1478_v20  ;;  %v359_v20 = vld [vmem:[#allocation7 + $0x88] sm:$0xff]  ;;  %v1508_v28 = vpack.c.bf16 %v356_v19, %v354_v18  ;;  %v381_v18 = vld [vmem:[#allocation7 + $0x138] sm:$0xff]  ;;  %v1650_v19 = vpack.c.bf16 %v931_v11, %v929_v10  ;;  %v400_v10 = vld [vmem:[#allocation7 + $0x1d0] sm:$0xff] }
  0x9b   : > { %v1510_v29 = vpack.c.bf16 %v361_v22, %v359_v20  ;;  %v928_v20 = vld [vmem:[#allocation9 + $0x2e0] sm:$0xff]  ;;  %v933_v22 = vld [vmem:[#allocation9 + $0x308] sm:$0xff] }
  0x9c   : > { %v403_v11 = vld [vmem:[#allocation7 + $0x1e8] sm:$0xff] }
  0x9d   : > { %1481 = vmatpush1.bf16.msra.mxu0 %v1480_v25  ;;  %v910_v25 = vld [vmem:[#allocation9 + $0x250] sm:$0xff] }
  0x9e   : > { %1483 = vmatprep.subr.bf16.mxu0 %v1482_v26  ;;  %v913_v26 = vld [vmem:[#allocation9 + $0x268] sm:$0xff]  ;;  %v1632_v33 = vpack.c.bf16 %v910_v25, %v908_v24  ;;  %v1528_v24 = vpack.c.bf16 %v376_v15, %v374_v14  ;;  %v402_v15 = vld [vmem:[#allocation7 + $0x1e0] sm:$0xff] }
  0x9f   : > { %v1634_v35 = vpack.c.bf16 %v915_v27, %v913_v26  ;;  %v378_v26 = vld [vmem:[#allocation7 + $0x120] sm:$0xff]  ;;  %v380_v27 = vld [vmem:[#allocation7 + $0x130] sm:$0xff] }
  0xa0   : > { %1633 = vmatpush1.bf16.msra.mxu1 %v1632_v33  ;;  %v934_v33 = vld [vmem:[#allocation9 + $0x310] sm:$0xff] }
  0xa1   : > { %1485 = vmatpush1.bf16.msra.mxu0 %v1484_v31  ;;  %v360_v31 = vld [vmem:[#allocation7 + $0x90] sm:$0xff]  ;;  %1635 = vmatprep.subr.bf16.mxu1 %v1634_v35  ;;  %v939_v35 = vld [vmem:[#allocation9 + $0x338] sm:$0xff] }
  0xa2   : > { %1487 = vmatprep.subr.bf16.mxu0 %v1486_v32  ;;  %v363_v32 = vld [vmem:[#allocation7 + $0xa8] sm:$0xff]  ;;  %v1512_v40 = vpack.c.bf16 %v360_v31, %v358_v30  ;;  %v385_v30 = vld [vmem:[#allocation7 + $0x158] sm:$0xff]  ;;  %v1654_v31 = vpack.c.bf16 %v935_v23, %v933_v22  ;;  %v635_v23 = vld [vmem:[#allocation7 + $0x400] sm:$0xff] }
  0xa3   : > { %v1514_v41 = vpack.c.bf16 %v365_v34, %v363_v32  ;;  %v932_v32 = vld [vmem:[#allocation9 + $0x300] sm:$0xff]  ;;  %v937_v34 = vld [vmem:[#allocation9 + $0x328] sm:$0xff] }
  0xa4   : > { %v1658_v43 = vpack.c.bf16 %v939_v35, %v937_v34  ;;  %v644_v35 = vld [vmem:[#allocation7 + $0x448] sm:$0xff] }
  0xa5   : > { %1489 = vmatpush1.bf16.msra.mxu0 %v1488_v37  ;;  %v914_v37 = vld [vmem:[#allocation9 + $0x270] sm:$0xff] }
  0xa6   : > { %1491 = vmatprep.subr.bf16.mxu0 %v1490_v39  ;;  %v919_v39 = vld [vmem:[#allocation9 + $0x298] sm:$0xff] }
  0xa7   : > { %v1638_v47 = vpack.c.bf16 %v919_v39, %v917_v38  ;;  %v382_v38 = vld [vmem:[#allocation7 + $0x140] sm:$0xff]  ;;  %v384_v39 = vld [vmem:[#allocation7 + $0x150] sm:$0xff] }
  0xa9   : > { %1493 = vmatpush1.bf16.msra.mxu0 %v1492_v45  ;;  %v1636_v45 = vpack.c.bf16 %v914_v37, %v912_v36  ;;  %v1532_v36 = vpack.c.bf16 %v380_v27, %v378_v26  ;;  %v640_v27 = vld [vmem:[#allocation7 + $0x428] sm:$0xff] }
  0xaa   : > { %1495 = vmatprep.subr.bf16.mxu0 %v1494_v48  ;;  %v916_v48 = vld [vmem:[#allocation9 + $0x280] sm:$0xff] }
  0xab   : > { %1637 = vmatpush1.bf16.msra.mxu1 %v1636_v45  ;;  %v1640_v57 = vpack.c.bf16 %v918_v49, %v916_v48  ;;  %v938_v45 = vld [vmem:[#allocation9 + $0x330] sm:$0xff]  ;;  %v1536_v48 = vpack.c.bf16 %v384_v39, %v382_v38  ;;  %v643_v39 = vld [vmem:[#allocation7 + $0x440] sm:$0xff] }
  0xac   : > { %553 = vmatmul.mubr.f32.vlgmr.msra.gmra.mrb[0].mxu0 %v482_v53  ;;  %v1518_v53 = vpack.c.bf16 %v369_v46, %v367_v44  ;;  %1639 = vmatprep.subr.bf16.mxu1 %v1638_v47  ;;  %v936_v44 = vld [vmem:[#allocation9 + $0x320] sm:$0xff]  ;;  %v941_v46 = vld [vmem:[#allocation9 + $0x348] sm:$0xff]  ;;  %v943_v47 = vld [vmem:[#allocation9 + $0x358] sm:$0xff] }
  0xad   : > { %1497 = vmatpush1.bf16.msra.mxu0 %v1496_v54  ;;  %623 = vmatprep.mubr.f32.mxu0 %v341_v58  ;;  %v366_v54 = vld [vmem:[#allocation7 + $0xc0] sm:$0xff]  ;;  %v373_v58 = vld [vmem:[#allocation7 + $0xf8] sm:$0xff] }
  0xae   : > { %1499 = vmatprep.subr.bf16.mxu0 %v1498_v55  ;;  %v368_v55 = vld [vmem:[#allocation7 + $0xd0] sm:$0xff]  ;;  %v1522_v1 = vpack.c.bf16 %v373_v58, %v371_v56  ;;  %v940_v56 = vld [vmem:[#allocation9 + $0x340] sm:$0xff]  ;;  %v1540_v58 = vpack.c.bf16 %v388_v51, %v386_v50 }
  0xaf   : > { %v1520_v0 = vpack.c.bf16 %v368_v55, %v366_v54  ;;  %1641 = vmatpush1.bf16.msra.mxu1 %v1640_v57  ;;  %v393_v54 = vld [vmem:[#allocation7 + $0x198] sm:$0xff]  ;;  %v1662_v55 = vpack.c.bf16 %v943_v47, %v941_v46  ;;  %v942_v57 = vld [vmem:[#allocation9 + $0x350] sm:$0xff]  ;;  %v652_v47 = vld [vmem:[#allocation7 + $0x488] sm:$0xff] }
  0xb0   : > { %1643 = vmatprep.subr.bf16.mxu1 %v1642_v59  ;;  %v649_v46 = vld [vmem:[#allocation7 + $0x470] sm:$0xff]  ;;  %v651_v51 = vld [vmem:[#allocation7 + $0x480] sm:$0xff] }
  0xb1   : > { %1501 = vmatpush1.bf16.msra.mxu0 %v1500_v63  ;;  %v927_v63 = vld [vmem:[#allocation9 + $0x2d8] sm:$0xff] }
  0xb2   : > { %1503 = vmatprep.subr.bf16.mxu0 %v1502_v3  ;;  %v372_v3 = vld [vmem:[#allocation7 + $0xf0] sm:$0xff]  ;;  %v1646_v7 = vpack.c.bf16 %v927_v63, %v925_v62  ;;  %v1664_v62 = vpack.c.bf16 %v942_v57, %v940_v56  ;;  %v395_v63 = vld [vmem:[#allocation7 + $0x1a8] sm:$0xff]  ;;  %v655_v57 = vld [vmem:[#allocation7 + $0x4a0] sm:$0xff] }
  0xb3   : > { %v1524_v12 = vpack.c.bf16 %v372_v3, %v370_v2  ;;  %1645 = vmatpush1.bf16.msra.mxu1 %v1644_v5  ;;  %v394_v3 = vld [vmem:[#allocation7 + $0x1a0] sm:$0xff]  ;;  %v399_v5 = vld [vmem:[#allocation7 + $0x1c8] sm:$0xff] }
  0xb4   : > { %1647 = vmatprep.subr.bf16.mxu1 %v1646_v7  ;;  %v1548_v7 = vpack.c.bf16 %v396_v4, %v394_v3 }
  0xb5   : > { %1505 = vmatpush1.bf16.msra.mxu0 %v1504_v16  ;;  %v379_v16 = vld [vmem:[#allocation7 + $0x128] sm:$0xff] }
  0xb6   : > { %1507 = vmatprep.subr.bf16.mxu0 %v1506_v17  ;;  %v1648_v17 = vpack.c.bf16 %v926_v9, %v924_v8  ;;  %v1530_v25 = vpack.c.bf16 %v381_v18, %v379_v16  ;;  %v1550_v8 = vpack.c.bf16 %v401_v6, %v399_v5  ;;  %v398_v9 = vld [vmem:[#allocation7 + $0x1c0] sm:$0xff]  ;;  %v404_v16 = vld [vmem:[#allocation7 + $0x1f0] sm:$0xff]  ;;  %v638_v18 = vld [vmem:[#allocation7 + $0x418] sm:$0xff] }
  0xb7   : > { %v663_v5 = vld [vmem:[#allocation7 + $0x4e0] sm:$0xff]  ;;  %v665_v6 = vld [vmem:[#allocation7 + $0x4f0] sm:$0xff] }
  0xb8   : > { %1649 = vmatpush1.bf16.msra.mxu1 %v1648_v17  ;;  %v636_v17 = vld [vmem:[#allocation7 + $0x408] sm:$0xff] }
  0xb9   : > { %1509 = vmatpush1.bf16.msra.mxu0 %v1508_v28  ;;  %v383_v28 = vld [vmem:[#allocation7 + $0x148] sm:$0xff]  ;;  %1651 = vmatprep.subr.bf16.mxu1 %v1650_v19  ;;  %v1558_v22 = vpack.c.bf16 %v638_v18, %v636_v17  ;;  %v671_v17 = vld [vmem:[#allocation7 + $0x520] sm:$0xff]  ;;  %v673_v18 = vld [vmem:[#allocation7 + $0x530] sm:$0xff] }
  0xba   : > { %1511 = vmatprep.subr.bf16.mxu0 %v1510_v29  ;;  %v1652_v29 = vpack.c.bf16 %v930_v21, %v928_v20  ;;  %v1534_v37 = vpack.c.bf16 %v385_v30, %v383_v28  ;;  %v631_v19 = vld [vmem:[#allocation2 + $0x8] sm:$0xfc]  ;;  %v633_v20 = vld [vmem:[#allocation2 + $0x18] sm:$0x3]  ;;  %v1556_v21 = vpack.c.bf16 %v404_v16, %v402_v15 }
  0xbb   : > { %v708_v26 = vrot.slane %v633_v20, 2  ;;  %v642_v28 = vld [vmem:[#allocation7 + $0x438] sm:$0xff] }
  0xbc   : > { %1653 = vmatpush1.bf16.msra.mxu1 %v1652_v29  ;;  %v340_v29 = vld [vmem:[#allocation2] sm:$0xff]  ;;  %v678_v20 = vld [vmem:[#allocation7 + $0x558] sm:$0xff] }
  0xbd   : > { %1513 = vmatpush1.bf16.msra.mxu0 %v1512_v40  ;;  %v387_v40 = vld [vmem:[#allocation7 + $0x168] sm:$0xff]  ;;  %1655 = vmatprep.subr.bf16.mxu1 %v1654_v31  ;;  %v1562_v31 = vpack.c.bf16 %v642_v28, %v640_v27 }
  0xbe   : > { %1515 = vmatprep.subr.bf16.mxu0 %v1514_v41  ;;  %v1656_v41 = vpack.c.bf16 %v934_v33, %v932_v32  ;;  %v1538_v49 = vpack.c.bf16 %v389_v42, %v387_v40  ;;  %v639_v32 = vld [vmem:[#allocation7 + $0x420] sm:$0xff]  ;;  %v641_v33 = vld [vmem:[#allocation7 + $0x430] sm:$0xff]  ;;  %v650_v42 = vld [vmem:[#allocation7 + $0x478] sm:$0xff] }
  0xbf   : > { %v645_v40 = vld [vmem:[#allocation7 + $0x450] sm:$0xff] }
  0xc0   : > { %1657 = vmatpush1.bf16.msra.mxu1 %v1656_v41  ;;  %v648_v41 = vld [vmem:[#allocation7 + $0x468] sm:$0xff] }
  0xc1   : > { %1517 = vmatpush1.bf16.msra.mxu0 %v1516_v52  ;;  %v391_v52 = vld [vmem:[#allocation7 + $0x188] sm:$0xff]  ;;  %1659 = vmatprep.subr.bf16.mxu1 %v1658_v43  ;;  %v1568_v43 = vpack.c.bf16 %v645_v40, %v643_v39 }
  0xc2   : > { %1519 = vmatprep.subr.bf16.mxu0 %v1518_v53  ;;  %v1660_v53 = vpack.c.bf16 %v938_v45, %v936_v44  ;;  %v1542_v59 = vpack.c.bf16 %v393_v54, %v391_v52  ;;  %v1570_v44 = vpack.c.bf16 %v650_v42, %v648_v41  ;;  %v647_v45 = vld [vmem:[#allocation7 + $0x460] sm:$0xff]  ;;  %v653_v52 = vld [vmem:[#allocation7 + $0x490] sm:$0xff]  ;;  %v658_v54 = vld [vmem:[#allocation7 + $0x4b8] sm:$0xff] }
  0xc3   : > { %v687_v41 = vld [vmem:[#allocation7 + $0x5a0] sm:$0xff]  ;;  %v689_v42 = vld [vmem:[#allocation7 + $0x5b0] sm:$0xff] }
  0xc4   : > { %1661 = vmatpush1.bf16.msra.mxu1 %v1660_v53  ;;  %v656_v53 = vld [vmem:[#allocation7 + $0x4a8] sm:$0xff] }
  0xc5   : > { %1521 = vmatpush1.bf16.msra.mxu0 %v1520_v0  ;;  %v397_v0 = vld [vmem:[#allocation7 + $0x1b8] sm:$0xff]  ;;  %1663 = vmatprep.subr.bf16.mxu1 %v1662_v55  ;;  %v1576_v55 = vpack.c.bf16 %v653_v52, %v651_v51  ;;  %v1578_v56 = vpack.c.bf16 %v658_v54, %v656_v53  ;;  %v695_v52 = vld [vmem:[#allocation7 + $0x5e0] sm:$0xff]  ;;  %v697_v54 = vld [vmem:[#allocation7 + $0x5f0] sm:$0xff] }
  0xc6   : > { %1523 = vmatprep.subr.bf16.mxu0 %v1522_v1  ;;  %v1544_v1 = vpack.c.bf16 %v392_v61, %v390_v60  ;;  %v1546_v2 = vpack.c.bf16 %v397_v0, %v395_v63  ;;  %v662_v60 = vld [vmem:[#allocation7 + $0x4d8] sm:$0xff]  ;;  %v659_v63 = vld [vmem:[#allocation7 + $0x4c0] sm:$0xff]  ;;  %v661_v0 = vld [vmem:[#allocation7 + $0x4d0] sm:$0xff] }
  0xc7   : > { %v1584_v3 = vpack.c.bf16 %v661_v0, %v659_v63  ;;  %v944_v0 = vld [vmem:[#allocation9 + $0x360] sm:$0xff] }
  0xc8   : > { %1665 = vmatpush1.bf16.msra.mxu1 %v1664_v62 }
  0xc9   : > { %1525 = vmatpush1.bf16.msra.mxu0 %v1524_v12  ;;  %v405_v12 = vld [vmem:[#allocation7 + $0x1f8] sm:$0xff] }
  0xca   : > { %1527 = vmatprep.subr.bf16.mxu0 %v1526_v13  ;;  %v1552_v13 = vpack.c.bf16 %v400_v10, %v398_v9  ;;  %v1554_v14 = vpack.c.bf16 %v405_v12, %v403_v11  ;;  %v1588_v9 = vpack.c.bf16 %v665_v6, %v663_v5  ;;  %v667_v11 = vld [vmem:[#allocation7 + $0x500] sm:$0xff]  ;;  %v669_v12 = vld [vmem:[#allocation7 + $0x510] sm:$0xff] }
  0xcb   : > { %v1592_v15 = vpack.c.bf16 %v669_v12, %v667_v11  ;;  %v948_v6 = vld [vmem:[#allocation9 + $0x380] sm:$0xff] }
  0xcc   : > { %v952_v12 = vld [vmem:[#allocation9 + $0x3a0] sm:$0xff] }
  0xcd   : > { %1529 = vmatpush1.bf16.msra.mxu0 %v1528_v24  ;;  %v637_v24 = vld [vmem:[#allocation7 + $0x410] sm:$0xff] }
  0xce   : > { %1531 = vmatprep.subr.bf16.mxu0 %v1530_v25  ;;  %v707_v25 = vrot.slane %v631_v19, 2  ;;  %v1560_v30 = vpack.c.bf16 %v637_v24, %v635_v23  ;;  %v676_v19 = vld [vmem:[#allocation7 + $0x548] sm:$0xff]  ;;  %v675_v23 = vld [vmem:[#allocation7 + $0x540] sm:$0xff]  ;;  %v677_v24 = vld [vmem:[#allocation7 + $0x550] sm:$0xff] }
  0xcf   : > { %v1600_v27 = vpack.c.bf16 %v677_v24, %v675_v23  ;;  %v960_v24 = vld [vmem:[#allocation9 + $0x3e0] sm:$0xff] }
  0xd0   : > { %v709_v34 = vsel %vm703_vm1, %v707_v25, %v708_v26  ;;  %v680_v25 = vld [vmem:[#allocation7 + $0x568] sm:$0xff]  ;;  %v682_v26 = vld [vmem:[#allocation7 + $0x578] sm:$0xff] }
  0xd1   : > { %1533 = vmatpush1.bf16.msra.mxu0 %v1532_v36  ;;  %v646_v36 = vld [vmem:[#allocation7 + $0x458] sm:$0xff]  ;;  %v1602_v28 = vpack.c.bf16 %v682_v26, %v680_v25  ;;  %v962_v25 = vld [vmem:[#allocation9 + $0x3f0] sm:$0xff] }
  0xd2   : > { %1535 = vmatprep.subr.bf16.mxu0 %v1534_v37  ;;  %v1564_v37 = vpack.c.bf16 %v641_v33, %v639_v32  ;;  %v1566_v38 = vpack.c.bf16 %v646_v36, %v644_v35  ;;  %v686_v32 = vld [vmem:[#allocation7 + $0x598] sm:$0xff]  ;;  %v683_v35 = vld [vmem:[#allocation7 + $0x580] sm:$0xff]  ;;  %v685_v36 = vld [vmem:[#allocation7 + $0x590] sm:$0xff]  ;;  %v1684_v26 = vpack.c.bf16 %v962_v25, %v960_v24 }
  0xd3   : > { %v1608_v39 = vpack.c.bf16 %v685_v36, %v683_v35  ;;  %v799_v35 = vld [vmem:[%s2373_s3] sm:$0x3]  ;;  %v854_v24 = vld [vmem:[#allocation9 + $0xb8] sm:$0xff] }
  0xd5   : > { %1537 = vmatpush1.bf16.msra.mxu0 %v1536_v48  ;;  %v654_v48 = vld [vmem:[#allocation7 + $0x498] sm:$0xff] }
  0xd6   : > { %1539 = vmatprep.subr.bf16.mxu0 %v1538_v49  ;;  %v1572_v49 = vpack.c.bf16 %v649_v46, %v647_v45  ;;  %v1574_v50 = vpack.c.bf16 %v654_v48, %v652_v47  ;;  %v1612_v45 = vpack.c.bf16 %v689_v42, %v687_v41  ;;  %v691_v47 = vld [vmem:[#allocation7 + $0x5c0] sm:$0xff]  ;;  %v693_v48 = vld [vmem:[#allocation7 + $0x5d0] sm:$0xff] }
  0xd7   : > { %v1616_v51 = vpack.c.bf16 %v693_v48, %v691_v47 }
  0xd9   : > { %1541 = vmatpush1.bf16.msra.mxu0 %v1540_v58  ;;  %v657_v58 = vld [vmem:[#allocation7 + $0x4b0] sm:$0xff] }
  0xda   : > { %1543 = vmatprep.subr.bf16.mxu0 %v1542_v59  ;;  %v660_v59 = vld [vmem:[#allocation7 + $0x4c8] sm:$0xff]  ;;  %v1580_v61 = vpack.c.bf16 %v657_v58, %v655_v57  ;;  %v1620_v57 = vpack.c.bf16 %v697_v54, %v695_v52 }
  0xdb   : > { %v1582_v62 = vpack.c.bf16 %v662_v60, %v660_v59  ;;  %v836_v52 = vld [vmem:[#allocation9 + $0x28] sm:$0xff] }
  0xdd   : > { %1545 = vmatpush1.bf16.msra.mxu0 %v1544_v1  ;;  %v664_v1 = vld [vmem:[#allocation7 + $0x4e8] sm:$0xff] }
  0xde   : > { %1547 = vmatprep.subr.bf16.mxu0 %v1546_v2  ;;  %v666_v2 = vld [vmem:[#allocation7 + $0x4f8] sm:$0xff] }
  0xdf   : > { %v1586_v4 = vpack.c.bf16 %v666_v2, %v664_v1  ;;  %v946_v1 = vld [vmem:[#allocation9 + $0x370] sm:$0xff] }
  0xe0   : > { %v1668_v2 = vpack.c.bf16 %v946_v1, %v944_v0  ;;  %v835_v1 = vld [vmem:[#allocation9 + $0x20] sm:$0xff] }
  0xe1   : > { %1549 = vmatpush1.bf16.msra.mxu0 %v1548_v7  ;;  %v668_v7 = vld [vmem:[#allocation7 + $0x508] sm:$0xff] }
  0xe2   : > { %1551 = vmatprep.subr.bf16.mxu0 %v1550_v8  ;;  %v670_v8 = vld [vmem:[#allocation7 + $0x518] sm:$0xff] }
  0xe3   : > { %v1590_v10 = vpack.c.bf16 %v670_v8, %v668_v7  ;;  %v950_v7 = vld [vmem:[#allocation9 + $0x390] sm:$0xff] }
  0xe4   : > { %v1672_v8 = vpack.c.bf16 %v950_v7, %v948_v6 }
  0xe5   : > { %1553 = vmatpush1.bf16.msra.mxu0 %v1552_v13  ;;  %v672_v13 = vld [vmem:[#allocation7 + $0x528] sm:$0xff] }
  0xe6   : > { %1555 = vmatprep.subr.bf16.mxu0 %v1554_v14  ;;  %v674_v14 = vld [vmem:[#allocation7 + $0x538] sm:$0xff] }
  0xe7   : > { %v1594_v16 = vpack.c.bf16 %v674_v14, %v672_v13  ;;  %v954_v13 = vld [vmem:[#allocation9 + $0x3b0] sm:$0xff] }
  0xe8   : > { %v1676_v14 = vpack.c.bf16 %v954_v13, %v952_v12  ;;  %v846_v12 = vld [vmem:[#allocation9 + $0x78] sm:$0xff] }
  0xe9   : > { %1557 = vmatpush1.bf16.msra.mxu0 %v1556_v21  ;;  %v1596_v21 = vpack.c.bf16 %v673_v18, %v671_v17  ;;  %v956_v17 = vld [vmem:[#allocation9 + $0x3c0] sm:$0xff] }
  0xea   : > { %1559 = vmatprep.subr.bf16.mxu0 %v1558_v22  ;;  %v1598_v22 = vpack.c.bf16 %v678_v20, %v676_v19  ;;  %v958_v19 = vld [vmem:[#allocation9 + $0x3d0] sm:$0xff]  ;;  %v961_v20 = vld [vmem:[#allocation9 + $0x3e8] sm:$0xff] }
  0xec   : > { %624 = vmatmul.mubr.f32.vlgmr.msra.gmra.mrb[0].mxu0 %v340_v29  ;;  %v679_v29 = vld [vmem:[#allocation7 + $0x560] sm:$0xff] }
  0xed   : > { %1561 = vmatpush1.bf16.msra.mxu0 %v1560_v30  ;;  %776 = vmatprep.mubr.f32.mxu0 %v709_v34  ;;  %v681_v30 = vld [vmem:[#allocation7 + $0x570] sm:$0xff] }
  0xee   : > { %1563 = vmatprep.subr.bf16.mxu0 %v1562_v31  ;;  %v684_v31 = vld [vmem:[#allocation7 + $0x588] sm:$0xff]  ;;  %v1604_v33 = vpack.c.bf16 %v681_v30, %v679_v29  ;;  %v787_v30 = vlaneseq }
  0xef   : > { %v1606_v34 = vpack.c.bf16 %v686_v32, %v684_v31 }
  0xf0   : > { %v788_v31 = vshrl.u32 %v787_v30, 7  ;;  %v858_v30 = vld [vmem:[#allocation9 + $0xd8] sm:$0xff] }
  0xf1   : > { %1565 = vmatpush1.bf16.msra.mxu0 %v1564_v37  ;;  %v688_v37 = vld [vmem:[#allocation7 + $0x5a8] sm:$0xff] }
  0xf2   : > { %1567 = vmatprep.subr.bf16.mxu0 %v1566_v38  ;;  %v690_v38 = vld [vmem:[#allocation7 + $0x5b8] sm:$0xff]  ;;  %v2290_v32 = vsub.s32 0, %v788_v31 }
  0xf3   : > { %v1610_v40 = vpack.c.bf16 %v690_v38, %v688_v37 }
  0xf4   : > { %v804_v38 = vrot.slane %v799_v35, %v2290_v32 }
  0xf5   : > { %1569 = vmatpush1.bf16.msra.mxu0 %v1568_v43  ;;  %v692_v43 = vld [vmem:[#allocation7 + $0x5c8] sm:$0xff] }
  0xf6   : > { %1571 = vmatprep.subr.bf16.mxu0 %v1570_v44  ;;  %v694_v44 = vld [vmem:[#allocation7 + $0x5d8] sm:$0xff] }
  0xf7   : > { %v1614_v46 = vpack.c.bf16 %v694_v44, %v692_v43 }
  0xf9   : > { %1573 = vmatpush1.bf16.msra.mxu0 %v1572_v49  ;;  %v696_v49 = vld [vmem:[#allocation7 + $0x5e8] sm:$0xff] }
  0xfa   : > { %1575 = vmatprep.subr.bf16.mxu0 %v1574_v50  ;;  %v698_v50 = vld [vmem:[#allocation7 + $0x5f8] sm:$0xff] }
  0xfb   : > { %v1618_v53 = vpack.c.bf16 %v698_v50, %v696_v49  ;;  %v831_v50 = vld [vmem:[#allocation9] sm:$0xff] }
  0xfd   : > { %1577 = vmatpush1.bf16.msra.mxu0 %v1576_v55  ;;  %v630_v55 = vld [vmem:[#allocation2] sm:$0xfc] }
  0xfe   : > { %1579 = vmatprep.subr.bf16.mxu0 %v1578_v56  ;;  %v632_v56 = vld [vmem:[#allocation2 + $0x10] sm:$0x3]  ;;  %v704_v58 = vrot.slane %v630_v55, 2  ;;  %v838_v55 = vld [vmem:[#allocation9 + $0x38] sm:$0xff] }
  0xff   : > { %v705_v59 = vrot.slane %v632_v56, 2  ;;  %v1690_v0 = vpack.c.bf16 %v838_v55, %v836_v52  ;;  %v872_v55 = vld [vmem:[#allocation9 + $0x148] sm:$0xff] }
 0x101   : > { %1581 = vmatpush1.bf16.msra.mxu0 %v1580_v61  ;;  %v706_v60 = vsel %vm703_vm1, %v704_v58, %v705_v59  ;;  %v945_v61 = vld [vmem:[#allocation9 + $0x368] sm:$0xff] }
 0x102   : > { %1583 = vmatprep.subr.bf16.mxu0 %v1582_v62  ;;  %v947_v62 = vld [vmem:[#allocation9 + $0x378] sm:$0xff] }
 0x103   : > { %v1666_v63 = vpack.c.bf16 %v947_v62, %v945_v61 }
 0x105   : > { %1585 = vmatpush1.bf16.msra.mxu0 %v1584_v3  ;;  %1667 = vmatprep.subr.bf16.mxu1 %v1666_v63  ;;  %v949_v3 = vld [vmem:[#allocation9 + $0x388] sm:$0xff] }
 0x106   : > { %1587 = vmatprep.subr.bf16.mxu0 %v1586_v4  ;;  %1669 = vmatpush1.bf16.msra.mxu1 %v1668_v2  ;;  %v951_v4 = vld [vmem:[#allocation9 + $0x398] sm:$0xff]  ;;  %v837_v2 = vld [vmem:[#allocation9 + $0x30] sm:$0xff] }
 0x107   : > { %v1670_v5 = vpack.c.bf16 %v951_v4, %v949_v3  ;;  %v840_v4 = vld [vmem:[#allocation9 + $0x48] sm:$0xff]  ;;  %v1692_v7 = vpack.c.bf16 %v837_v2, %v835_v1  ;;  %v875_v1 = vld [vmem:[#allocation9 + $0x160] sm:$0xff]  ;;  %v877_v2 = vld [vmem:[#allocation9 + $0x170] sm:$0xff] }
 0x109   : > { %1589 = vmatpush1.bf16.msra.mxu0 %v1588_v9  ;;  %1671 = vmatprep.subr.bf16.mxu1 %v1670_v5  ;;  %v953_v9 = vld [vmem:[#allocation9 + $0x3a8] sm:$0xff]  ;;  %v842_v5 = vld [vmem:[#allocation9 + $0x58] sm:$0xff] }
 0x10a   : > { %1591 = vmatprep.subr.bf16.mxu0 %v1590_v10  ;;  %1673 = vmatpush1.bf16.msra.mxu1 %v1672_v8  ;;  %v955_v10 = vld [vmem:[#allocation9 + $0x3b8] sm:$0xff]  ;;  %v1694_v8 = vpack.c.bf16 %v842_v5, %v840_v4  ;;  %v1732_v5 = vpack.c.bf16 %v877_v2, %v875_v1  ;;  %v1144_v1 = vld [vmem:[#allocation9 + $0x4a8] sm:$0xff] }
 0x10b   : > { %v1674_v11 = vpack.c.bf16 %v955_v10, %v953_v9  ;;  %v839_v9 = vld [vmem:[#allocation9 + $0x40] sm:$0xff]  ;;  %v841_v10 = vld [vmem:[#allocation9 + $0x50] sm:$0xff]  ;;  %v882_v4 = vld [vmem:[#allocation9 + $0x198] sm:$0xff] }
 0x10c   : > { %v1696_v13 = vpack.c.bf16 %v841_v10, %v839_v9  ;;  %v884_v9 = vld [vmem:[#allocation9 + $0x1a8] sm:$0xff]  ;;  %v886_v10 = vld [vmem:[#allocation9 + $0x1b8] sm:$0xff] }
 0x10d   : > { %1593 = vmatpush1.bf16.msra.mxu0 %v1592_v15  ;;  %1675 = vmatprep.subr.bf16.mxu1 %v1674_v11  ;;  %v957_v15 = vld [vmem:[#allocation9 + $0x3c8] sm:$0xff]  ;;  %v1146_v2 = vld [vmem:[#allocation9 + $0x4b8] sm:$0xff] }
 0x10e   : > { %1595 = vmatprep.subr.bf16.mxu0 %v1594_v16  ;;  %1677 = vmatpush1.bf16.msra.mxu1 %v1676_v14  ;;  %v959_v16 = vld [vmem:[#allocation9 + $0x3d8] sm:$0xff]  ;;  %v844_v11 = vld [vmem:[#allocation9 + $0x68] sm:$0xff] }
 0x10f   : > { %v1678_v18 = vpack.c.bf16 %v959_v16, %v957_v15  ;;  %v1698_v14 = vpack.c.bf16 %v846_v12, %v844_v11  ;;  %v843_v15 = vld [vmem:[#allocation9 + $0x60] sm:$0xff]  ;;  %v845_v16 = vld [vmem:[#allocation9 + $0x70] sm:$0xff]  ;;  %v1738_v12 = vpack.c.bf16 %v886_v10, %v884_v9 }
 0x111   : > { %1597 = vmatpush1.bf16.msra.mxu0 %v1596_v21  ;;  %v963_v21 = vld [vmem:[#allocation9 + $0x3f8] sm:$0xff]  ;;  %1679 = vmatprep.subr.bf16.mxu1 %v1678_v18 }
 0x112   : > { %1599 = vmatprep.subr.bf16.mxu0 %v1598_v22  ;;  %v1680_v22 = vpack.c.bf16 %v958_v19, %v956_v17  ;;  %v1682_v23 = vpack.c.bf16 %v963_v21, %v961_v20  ;;  %v848_v17 = vld [vmem:[#allocation9 + $0x88] sm:$0xff]  ;;  %v850_v18 = vld [vmem:[#allocation9 + $0x98] sm:$0xff]  ;;  %v1700_v19 = vpack.c.bf16 %v845_v16, %v843_v15  ;;  %v847_v21 = vld [vmem:[#allocation9 + $0x80] sm:$0xff] }
 0x113   : > { %v1702_v20 = vpack.c.bf16 %v850_v18, %v848_v17  ;;  %v888_v15 = vld [vmem:[#allocation9 + $0x1c8] sm:$0xff]  ;;  %v890_v16 = vld [vmem:[#allocation9 + $0x1d8] sm:$0xff] }
 0x114   : > { %1681 = vmatpush1.bf16.msra.mxu1 %v1680_v22  ;;  %v849_v22 = vld [vmem:[#allocation9 + $0x90] sm:$0xff]  ;;  %v1742_v18 = vpack.c.bf16 %v890_v16, %v888_v15 }
 0x115   : > { %1601 = vmatpush1.bf16.msra.mxu0 %v1600_v27  ;;  %1683 = vmatprep.subr.bf16.mxu1 %v1682_v23  ;;  %v832_v27 = vld [vmem:[#allocation9 + $0x8] sm:$0xff]  ;;  %v1704_v25 = vpack.c.bf16 %v849_v22, %v847_v21  ;;  %v894_v22 = vld [vmem:[#allocation9 + $0x1f8] sm:$0xff] }
 0x116   : > { %1603 = vmatprep.subr.bf16.mxu0 %v1602_v28  ;;  %v834_v28 = vld [vmem:[#allocation9 + $0x18] sm:$0xff]  ;;  %v852_v23 = vld [vmem:[#allocation9 + $0xa8] sm:$0xff] }
 0x117   : > { %v1686_v29 = vpack.c.bf16 %v834_v28, %v832_v27  ;;  %v851_v27 = vld [vmem:[#allocation9 + $0xa0] sm:$0xff]  ;;  %v853_v28 = vld [vmem:[#allocation9 + $0xb0] sm:$0xff]  ;;  %v892_v21 = vld [vmem:[#allocation9 + $0x1e8] sm:$0xff] }
 0x118   : > { %1685 = vmatpush1.bf16.msra.mxu1 %v1684_v26  ;;  %v1706_v26 = vpack.c.bf16 %v854_v24, %v852_v23  ;;  %v1746_v24 = vpack.c.bf16 %v894_v22, %v892_v21 }
 0x119   : > { %1605 = vmatpush1.bf16.msra.mxu0 %v1604_v33  ;;  %1687 = vmatprep.subr.bf16.mxu1 %v1686_v29  ;;  %v785_v33 = vld [vmem:[%s2372_s2] sm:$0x3]  ;;  %v856_v29 = vld [vmem:[#allocation9 + $0xc8] sm:$0xff] }
 0x11a   : > { %1607 = vmatprep.subr.bf16.mxu0 %v1606_v34  ;;  %v2295_v34 = vsub.s32 1, %v788_v31  ;;  %v790_v36 = vrot.slane %v785_v33, %v2290_v32  ;;  %v1708_v31 = vpack.c.bf16 %v853_v28, %v851_v27  ;;  %v1124_v27 = vld [vmem:[#allocation9 + $0x408] sm:$0xff]  ;;  %v1126_v28 = vld [vmem:[#allocation9 + $0x418] sm:$0xff] }
 0x11c   : > { %v794_v37 = vrot.slane %v785_v33, %v2295_v34  ;;  %v1710_v33 = vpack.c.bf16 %v858_v30, %v856_v29 }
 0x11d   : > { %1609 = vmatpush1.bf16.msra.mxu0 %v1608_v39 }
 0x11e   : > { %1611 = vmatprep.subr.bf16.mxu0 %v1610_v40  ;;  %v808_v40 = vrot.slane %v799_v35, %v2295_v34  ;;  %v855_v35 = vld [vmem:[#allocation9 + $0xc0] sm:$0xff] }
 0x121   : > { %1613 = vmatpush1.bf16.msra.mxu0 %v1612_v45 }
 0x122   : > { %1615 = vmatprep.subr.bf16.mxu0 %v1614_v46 }
 0x125   : > { %1617 = vmatpush1.bf16.msra.mxu0 %v1616_v51  ;;  %v833_v51 = vld [vmem:[#allocation9 + $0x10] sm:$0xff] }
 0x126   : > { %1619 = vmatprep.subr.bf16.mxu0 %v1618_v53  ;;  %v1688_v62 = vpack.c.bf16 %v833_v51, %v831_v50  ;;  %v870_v50 = vld [vmem:[#allocation9 + $0x138] sm:$0xff] }
 0x129   : > { %1621 = vmatpush1.bf16.msra.mxu0 %v1620_v57 }
 0x12c   : > { %777 = vmatmul.mubr.f32.vlgmr.msra.gmra.mrb[0].mxu0 %v706_v60 }
 0x1ff   : > { %v778_v39 = vpop.f32.mrb[0].mxu0 }
 0x200   : > { %v797_v41 = vmul.f32 %v790_v36, %v778_v39  ;;  %v780_v42 = vpop.f32.mrb[1].mxu0  ;;  %v857_v36 = vld [vmem:[#allocation9 + $0xd0] sm:$0xff] }
 0x201   : > { %v798_v43 = vmul.f32 %v794_v37, %v780_v42  ;;  %v860_v37 = vld [vmem:[#allocation9 + $0xe8] sm:$0xff]  ;;  %v1712_v39 = vpack.c.bf16 %v857_v36, %v855_v35  ;;  %v861_v42 = vld [vmem:[#allocation9 + $0xf0] sm:$0xff]  ;;  %v1123_v35 = vld [vmem:[#allocation9 + $0x400] sm:$0xff] }
 0x202   : > { %v811_v44 = vadd.f32 %v804_v38, %v797_v41  ;;  %v862_v38 = vld [vmem:[#allocation9 + $0xf8] sm:$0xff]  ;;  %v859_v41 = vld [vmem:[#allocation9 + $0xe0] sm:$0xff]  ;;  %v1125_v36 = vld [vmem:[#allocation9 + $0x410] sm:$0xff] }
 0x203   : > { %v812_v45 = vadd.f32 %v808_v40, %v798_v43  ;;  %v1714_v40 = vpack.c.bf16 %v862_v38, %v860_v37  ;;  %v864_v43 = vld [vmem:[#allocation9 + $0x108] sm:$0xff]  ;;  %v1130_v38 = vld [vmem:[#allocation9 + $0x438] sm:$0xff] }
 0x204   : > { %v813_v46 = vmax.f32 %v811_v44, 0.0  ;;  %v866_v44 = vld [vmem:[#allocation9 + $0x118] sm:$0xff]  ;;  %v1128_v37 = vld [vmem:[#allocation9 + $0x428] sm:$0xff] }
 0x205   : > { %v814_v47 = vmax.f32 %v812_v45, 0.0  ;;  %v1716_v45 = vpack.c.bf16 %v861_v42, %v859_v41  ;;  %v1752_v41 = vpack.c.bf16 %v1125_v36, %v1123_v35  ;;  %v1754_v42 = vpack.c.bf16 %v1130_v38, %v1128_v37  ;;  %v1163_v37 = vld [vmem:[#allocation9 + $0x540] sm:$0xff]  ;;  %v1165_v38 = vld [vmem:[#allocation9 + $0x550] sm:$0xff] }
 0x206   : > { %v821_v48 = vrot.slane %v813_v46, 7  ;;  %v1718_v46 = vpack.c.bf16 %v866_v44, %v864_v43  ;;  %v1127_v43 = vld [vmem:[#allocation9 + $0x420] sm:$0xff]  ;;  %v1129_v44 = vld [vmem:[#allocation9 + $0x430] sm:$0xff] }
 0x207   : > { %v822_v49 = vrot.slane %v814_v47, 7  ;;  %v863_v47 = vld [vmem:[#allocation9 + $0x100] sm:$0xff] }
 0x208   : > { %825 = vst [vmem:[#allocation3] sm:$0xfe] %v821_v48  ;;  %827 = vst [vmem:[#allocation3 + $0x10] sm:$0x1] %v821_v48  ;;  %v865_v48 = vld [vmem:[#allocation9 + $0x110] sm:$0xff] }
 0x209   : > { %826 = vst [vmem:[#allocation3 + $0x8] sm:$0xfe] %v822_v49  ;;  %828 = vst [vmem:[#allocation3 + $0x18] sm:$0x1] %v822_v49  ;;  %v868_v49 = vld [vmem:[#allocation9 + $0x128] sm:$0xff]  ;;  %v1720_v51 = vpack.c.bf16 %v865_v48, %v863_v47  ;;  %v1134_v47 = vld [vmem:[#allocation9 + $0x458] sm:$0xff] }
 0x20a   : > { %v1722_v52 = vpack.c.bf16 %v870_v50, %v868_v49  ;;  %v1756_v49 = vpack.c.bf16 %v1129_v44, %v1127_v43  ;;  %v1167_v43 = vld [vmem:[#allocation9 + $0x560] sm:$0xff]  ;;  %v1169_v44 = vld [vmem:[#allocation9 + $0x570] sm:$0xff] }
 0x20f   : > { %v895_v53 = vld [vmem:[#allocation3] sm:$0xfe]  ;;  %v897_v54 = vld [vmem:[#allocation3 + $0x10] sm:$0x1] }
 0x210   : > { %v896_v56 = vld [vmem:[#allocation3 + $0x8] sm:$0xfe]  ;;  %v898_v57 = vld [vmem:[#allocation3 + $0x18] sm:$0x1]  ;;  %v968_v58 = vrot.slane %v895_v53, 1  ;;  %v969_v59 = vrot.slane %v897_v54, 1 }
 0x211   : > { %v971_v60 = vrot.slane %v896_v56, 1  ;;  %v972_v61 = vrot.slane %v898_v57, 1  ;;  %v830_v6 = vld [vmem:[#allocation3 + $0x8] sm:$0xff]  ;;  %v867_v53 = vld [vmem:[#allocation9 + $0x120] sm:$0xff]  ;;  %v869_v54 = vld [vmem:[#allocation9 + $0x130] sm:$0xff] }
 0x212   : > { %v970_v3 = vsel %vm479_vm0, %v968_v58, %v969_v59  ;;  %v874_v56 = vld [vmem:[#allocation9 + $0x158] sm:$0xff]  ;;  %v1724_v57 = vpack.c.bf16 %v869_v54, %v867_v53  ;;  %v871_v59 = vld [vmem:[#allocation9 + $0x140] sm:$0xff]  ;;  %v1119_v30 = vld [vmem:[#allocation3 + $0x8] sm:$0xfc] }
 0x213   : > { %v973_v63 = vsel %vm479_vm0, %v971_v60, %v972_v61  ;;  %v1726_v58 = vpack.c.bf16 %v874_v56, %v872_v55  ;;  %v873_v60 = vld [vmem:[#allocation9 + $0x150] sm:$0xff]  ;;  %v876_v61 = vld [vmem:[#allocation9 + $0x168] sm:$0xff]  ;;  %v1138_v54 = vld [vmem:[#allocation9 + $0x478] sm:$0xff] }
 0x214   : > { %1040 = vmatprep.mubr.f32.mxu1 %v973_v63  ;;  %v1728_v63 = vpack.c.bf16 %v873_v60, %v871_v59  ;;  %v1136_v53 = vld [vmem:[#allocation9 + $0x468] sm:$0xff]  ;;  %v1142_v60 = vld [vmem:[#allocation9 + $0x498] sm:$0xff] }
 0x215   : > { %1041 = vmatmul.mubr.f32.vlgmr.msra.gmra.mrb[0].mxu1 %v970_v3  ;;  %v880_v3 = vld [vmem:[#allocation9 + $0x188] sm:$0xff]  ;;  %v1762_v56 = vpack.c.bf16 %v1138_v54, %v1136_v53 }
 0x216   : > { %1689 = vmatpush1.bf16.msra.mxu1 %v1688_v62  ;;  %1111 = vmatprep.mubr.f32.mxu1 %v830_v6  ;;  %v878_v62 = vld [vmem:[#allocation9 + $0x178] sm:$0xff]  ;;  %v1734_v6 = vpack.c.bf16 %v882_v4, %v880_v3  ;;  %v1140_v59 = vld [vmem:[#allocation9 + $0x488] sm:$0xff]  ;;  %v1770_v4 = vpack.c.bf16 %v1146_v2, %v1144_v1 }
 0x217   : > { %1691 = vmatprep.subr.bf16.mxu1 %v1690_v0  ;;  %v1730_v0 = vpack.c.bf16 %v878_v62, %v876_v61  ;;  %v1766_v62 = vpack.c.bf16 %v1142_v60, %v1140_v59 }
 0x21a   : > { %1693 = vmatpush1.bf16.msra.mxu1 %v1692_v7  ;;  %v879_v7 = vld [vmem:[#allocation9 + $0x180] sm:$0xff] }
 0x21b   : > { %1695 = vmatprep.subr.bf16.mxu1 %v1694_v8  ;;  %v881_v8 = vld [vmem:[#allocation9 + $0x190] sm:$0xff] }
 0x21c   : > { %v1736_v11 = vpack.c.bf16 %v881_v8, %v879_v7  ;;  %v1148_v7 = vld [vmem:[#allocation9 + $0x4c8] sm:$0xff]  ;;  %v1150_v8 = vld [vmem:[#allocation9 + $0x4d8] sm:$0xff] }
 0x21d   : > { %v1774_v10 = vpack.c.bf16 %v1150_v8, %v1148_v7 }
 0x21e   : > { %1697 = vmatpush1.bf16.msra.mxu1 %v1696_v13  ;;  %v883_v13 = vld [vmem:[#allocation9 + $0x1a0] sm:$0xff] }
 0x21f   : > { %1699 = vmatprep.subr.bf16.mxu1 %v1698_v14  ;;  %v885_v14 = vld [vmem:[#allocation9 + $0x1b0] sm:$0xff] }
 0x220   : > { %v1740_v17 = vpack.c.bf16 %v885_v14, %v883_v13  ;;  %v1152_v13 = vld [vmem:[#allocation9 + $0x4e8] sm:$0xff]  ;;  %v1154_v14 = vld [vmem:[#allocation9 + $0x4f8] sm:$0xff] }
 0x221   : > { %v1778_v16 = vpack.c.bf16 %v1154_v14, %v1152_v13 }
 0x222   : > { %1701 = vmatpush1.bf16.msra.mxu1 %v1700_v19  ;;  %v887_v19 = vld [vmem:[#allocation9 + $0x1c0] sm:$0xff] }
 0x223   : > { %1703 = vmatprep.subr.bf16.mxu1 %v1702_v20  ;;  %v889_v20 = vld [vmem:[#allocation9 + $0x1d0] sm:$0xff] }
 0x224   : > { %v1744_v23 = vpack.c.bf16 %v889_v20, %v887_v19  ;;  %v1156_v19 = vld [vmem:[#allocation9 + $0x508] sm:$0xff]  ;;  %v1158_v20 = vld [vmem:[#allocation9 + $0x518] sm:$0xff] }
 0x225   : > { %v1782_v22 = vpack.c.bf16 %v1158_v20, %v1156_v19 }
 0x226   : > { %1705 = vmatpush1.bf16.msra.mxu1 %v1704_v25  ;;  %v891_v25 = vld [vmem:[#allocation9 + $0x1e0] sm:$0xff] }
 0x227   : > { %1707 = vmatprep.subr.bf16.mxu1 %v1706_v26  ;;  %v893_v26 = vld [vmem:[#allocation9 + $0x1f0] sm:$0xff] }
 0x228   : > { %v1748_v29 = vpack.c.bf16 %v893_v26, %v891_v25  ;;  %v1160_v25 = vld [vmem:[#allocation9 + $0x528] sm:$0xff]  ;;  %v1162_v26 = vld [vmem:[#allocation9 + $0x538] sm:$0xff] }
 0x22a   : > { %1709 = vmatpush1.bf16.msra.mxu1 %v1708_v31  ;;  %v1121_v31 = vld [vmem:[#allocation3 + $0x18] sm:$0x3] }
 0x22b   : > { %1711 = vmatprep.subr.bf16.mxu1 %v1710_v33  ;;  %v1750_v33 = vpack.c.bf16 %v1126_v28, %v1124_v27  ;;  %v1786_v28 = vpack.c.bf16 %v1162_v26, %v1160_v25  ;;  %v1893_v25 = vld [vmem:[%s2274_s29 + $0x8] sm:$0xff] }
 0x22e   : > { %1713 = vmatpush1.bf16.msra.mxu1 %v1712_v39  ;;  %v1194_v39 = vrot.slane %v1119_v30, 2  ;;  %v1161_v30 = vld [vmem:[#allocation9 + $0x530] sm:$0xff] }
 0x22f   : > { %1715 = vmatprep.subr.bf16.mxu1 %v1714_v40  ;;  %v1195_v40 = vrot.slane %v1121_v31, 2  ;;  %v1164_v31 = vld [vmem:[#allocation9 + $0x548] sm:$0xff] }
 0x231   : > { %v1196_v48 = vsel %vm703_vm1, %v1194_v39, %v1195_v40  ;;  %v1168_v39 = vld [vmem:[#allocation9 + $0x568] sm:$0xff]  ;;  %v1170_v40 = vld [vmem:[#allocation9 + $0x578] sm:$0xff] }
 0x232   : > { %1717 = vmatpush1.bf16.msra.mxu1 %v1716_v45  ;;  %v829_v45 = vld [vmem:[#allocation3] sm:$0xff] }
 0x233   : > { %1719 = vmatprep.subr.bf16.mxu1 %v1718_v46  ;;  %v1132_v46 = vld [vmem:[#allocation9 + $0x448] sm:$0xff] }
 0x234   : > { %v1758_v50 = vpack.c.bf16 %v1134_v47, %v1132_v46  ;;  %v1174_v46 = vld [vmem:[#allocation9 + $0x598] sm:$0xff]  ;;  %v1796_v47 = vpack.c.bf16 %v1169_v44, %v1167_v43 }
 0x236   : > { %1721 = vmatpush1.bf16.msra.mxu1 %v1720_v51  ;;  %v1131_v51 = vld [vmem:[#allocation9 + $0x440] sm:$0xff] }
 0x237   : > { %1723 = vmatprep.subr.bf16.mxu1 %v1722_v52  ;;  %v1133_v52 = vld [vmem:[#allocation9 + $0x450] sm:$0xff] }
 0x238   : > { %v1760_v55 = vpack.c.bf16 %v1133_v52, %v1131_v51  ;;  %v1176_v51 = vld [vmem:[#allocation9 + $0x5a8] sm:$0xff]  ;;  %v1178_v52 = vld [vmem:[#allocation9 + $0x5b8] sm:$0xff] }
 0x239   : > { %v1802_v54 = vpack.c.bf16 %v1178_v52, %v1176_v51 }
 0x23a   : > { %1725 = vmatpush1.bf16.msra.mxu1 %v1724_v57  ;;  %v1135_v57 = vld [vmem:[#allocation9 + $0x460] sm:$0xff] }
 0x23b   : > { %1727 = vmatprep.subr.bf16.mxu1 %v1726_v58  ;;  %v1137_v58 = vld [vmem:[#allocation9 + $0x470] sm:$0xff] }
 0x23c   : > { %v1764_v61 = vpack.c.bf16 %v1137_v58, %v1135_v57  ;;  %v1180_v57 = vld [vmem:[#allocation9 + $0x5c8] sm:$0xff]  ;;  %v1182_v58 = vld [vmem:[#allocation9 + $0x5d8] sm:$0xff] }
 0x23d   : > { %v1806_v60 = vpack.c.bf16 %v1182_v58, %v1180_v57 }
 0x23e   : > { %1729 = vmatpush1.bf16.msra.mxu1 %v1728_v63  ;;  %v1139_v63 = vld [vmem:[#allocation9 + $0x480] sm:$0xff] }
 0x23f   : > { %1731 = vmatprep.subr.bf16.mxu1 %v1730_v0  ;;  %v1141_v0 = vld [vmem:[#allocation9 + $0x490] sm:$0xff] }
 0x240   : > { %v1768_v3 = vpack.c.bf16 %v1141_v0, %v1139_v63  ;;  %v1184_v63 = vld [vmem:[#allocation9 + $0x5e8] sm:$0xff]  ;;  %v1186_v0 = vld [vmem:[#allocation9 + $0x5f8] sm:$0xff] }
 0x241   : > { %v1810_v2 = vpack.c.bf16 %v1186_v0, %v1184_v63 }
 0x242   : > { %1733 = vmatpush1.bf16.msra.mxu1 %v1732_v5  ;;  %v1143_v5 = vld [vmem:[#allocation9 + $0x4a0] sm:$0xff] }
 0x243   : > { %1735 = vmatprep.subr.bf16.mxu1 %v1734_v6  ;;  %v1145_v6 = vld [vmem:[#allocation9 + $0x4b0] sm:$0xff] }
 0x244   : > { %v1772_v9 = vpack.c.bf16 %v1145_v6, %v1143_v5  ;;  %v1118_v5 = vld [vmem:[#allocation3] sm:$0xfc]  ;;  %v1120_v6 = vld [vmem:[#allocation3 + $0x10] sm:$0x3] }
 0x245   : > { %v1191_v8 = vrot.slane %v1118_v5, 2 }
 0x246   : > { %1737 = vmatpush1.bf16.msra.mxu1 %v1736_v11  ;;  %v1147_v11 = vld [vmem:[#allocation9 + $0x4c0] sm:$0xff] }
 0x247   : > { %1739 = vmatprep.subr.bf16.mxu1 %v1738_v12  ;;  %v1149_v12 = vld [vmem:[#allocation9 + $0x4d0] sm:$0xff] }
 0x248   : > { %v1776_v15 = vpack.c.bf16 %v1149_v12, %v1147_v11  ;;  %v1272_v11 = vld [vmem:[%s2375_s5] sm:$0x3] }
 0x249   : > { %v1286_v12 = vld [vmem:[%s2376_s6] sm:$0x3]  ;;  %v1277_v13 = vrot.slane %v1272_v11, %v2290_v32  ;;  %v1281_v14 = vrot.slane %v1272_v11, %v2295_v34 }
 0x24a   : > { %1741 = vmatpush1.bf16.msra.mxu1 %v1740_v17  ;;  %v1151_v17 = vld [vmem:[#allocation9 + $0x4e0] sm:$0xff] }
 0x24b   : > { %1743 = vmatprep.subr.bf16.mxu1 %v1742_v18  ;;  %v1153_v18 = vld [vmem:[#allocation9 + $0x4f0] sm:$0xff] }
 0x24c   : > { %v1780_v21 = vpack.c.bf16 %v1153_v18, %v1151_v17  ;;  %v1295_v17 = vrot.slane %v1286_v12, %v2295_v34 }
 0x24e   : > { %1745 = vmatpush1.bf16.msra.mxu1 %v1744_v23  ;;  %v1155_v23 = vld [vmem:[#allocation9 + $0x500] sm:$0xff] }
 0x24f   : > { %1747 = vmatprep.subr.bf16.mxu1 %v1746_v24  ;;  %v1157_v24 = vld [vmem:[#allocation9 + $0x510] sm:$0xff] }
 0x250   : > { %v1784_v27 = vpack.c.bf16 %v1157_v24, %v1155_v23  ;;  %v1892_v23 = vld [vmem:[%s2274_s29] sm:$0xff]  ;;  %s1984_s29 = sshll.u32 %s2058_s14, 4  ;;  %s1985_s29 = int_to_ptr.vmem [resolvable:$false] %s1984_s29 }
 0x251   : > { %s1986_s22 = scalar_lea.vmem %s1985_s29, 512  ;;  %p1987_p7 = scmp.lt.s32.totalorder %s2328_s23, %s1985_s29 }
 0x252   : > { %1749 = vmatpush1.bf16.msra.mxu1 %v1748_v29  ;;  %v1159_v29 = vld [vmem:[#allocation9 + $0x520] sm:$0xff]  ;;  %p1988_p9 = scmp.lt.s32.totalorder %s1986_s22, %s1980_s11 }
 0x253   : > { %1751 = vmatprep.subr.bf16.mxu1 %v1750_v33  ;;  %v1166_v33 = vld [vmem:[#allocation9 + $0x558] sm:$0xff]  ;;  %v1788_v35 = vpack.c.bf16 %v1161_v30, %v1159_v29 }
 0x254   : > { %v1790_v36 = vpack.c.bf16 %v1166_v33, %v1164_v31  ;;  %p1989_p12 = por %p1988_p9, %p1987_p7 }
 0x255   : > { %1112 = vmatmul.mubr.f32.vlgmr.msra.gmra.mrb[0].mxu1 %v829_v45  ;;  %v1172_v45 = vld [vmem:[#allocation9 + $0x588] sm:$0xff] }
 0x256   : > { %1753 = vmatpush1.bf16.msra.mxu1 %v1752_v41  ;;  %1263 = vmatprep.mubr.f32.mxu1 %v1196_v48  ;;  %v1792_v41 = vpack.c.bf16 %v1165_v38, %v1163_v37  ;;  %v1798_v48 = vpack.c.bf16 %v1174_v46, %v1172_v45  ;;  %p1990_p2 = pnand %p1989_p12, %p1983_p3 }
 0x257   : > { %1755 = vmatprep.subr.bf16.mxu1 %v1754_v42  ;;  %v1794_v42 = vpack.c.bf16 %v1170_v40, %v1168_v39 }
 0x25a   : > { %1757 = vmatpush1.bf16.msra.mxu1 %v1756_v49  ;;  %v1171_v49 = vld [vmem:[#allocation9 + $0x580] sm:$0xff] }
 0x25b   : > { %1759 = vmatprep.subr.bf16.mxu1 %v1758_v50  ;;  %v1173_v50 = vld [vmem:[#allocation9 + $0x590] sm:$0xff] }
 0x25c   : > { %v1800_v53 = vpack.c.bf16 %v1173_v50, %v1171_v49 }
 0x25e   : > { %1761 = vmatpush1.bf16.msra.mxu1 %v1760_v55  ;;  %v1175_v55 = vld [vmem:[#allocation9 + $0x5a0] sm:$0xff] }
 0x25f   : > { %1763 = vmatprep.subr.bf16.mxu1 %v1762_v56  ;;  %v1177_v56 = vld [vmem:[#allocation9 + $0x5b0] sm:$0xff] }
 0x260   : > { %v1804_v59 = vpack.c.bf16 %v1177_v56, %v1175_v55 }
 0x262   : > { %1765 = vmatpush1.bf16.msra.mxu1 %v1764_v61  ;;  %v1179_v61 = vld [vmem:[#allocation9 + $0x5c0] sm:$0xff] }
 0x263   : > { %1767 = vmatprep.subr.bf16.mxu1 %v1766_v62  ;;  %v1181_v62 = vld [vmem:[#allocation9 + $0x5d0] sm:$0xff] }
 0x264   : > { %v1808_v1 = vpack.c.bf16 %v1181_v62, %v1179_v61 }
 0x266   : > { %1769 = vmatpush1.bf16.msra.mxu1 %v1768_v3  ;;  %v1183_v3 = vld [vmem:[#allocation9 + $0x5e0] sm:$0xff] }
 0x267   : > { %1771 = vmatprep.subr.bf16.mxu1 %v1770_v4  ;;  %v1185_v4 = vld [vmem:[#allocation9 + $0x5f0] sm:$0xff] }
 0x268   : > { %v1812_v7 = vpack.c.bf16 %v1185_v4, %v1183_v3 }
 0x26a   : > { %1773 = vmatpush1.bf16.msra.mxu1 %v1772_v9  ;;  %v1192_v9 = vrot.slane %v1120_v6, 2 }
 0x26b   : > { %1775 = vmatprep.subr.bf16.mxu1 %v1774_v10 }
 0x26c   : > { %v1193_v10 = vsel %vm703_vm1, %v1191_v8, %v1192_v9 }
 0x26e   : > { %1777 = vmatpush1.bf16.msra.mxu1 %v1776_v15  ;;  %v1291_v15 = vrot.slane %v1286_v12, %v2290_v32 }
 0x26f   : > { %1779 = vmatprep.subr.bf16.mxu1 %v1778_v16 }
 0x272   : > { %1781 = vmatpush1.bf16.msra.mxu1 %v1780_v21 }
 0x273   : > { %1783 = vmatprep.subr.bf16.mxu1 %v1782_v22 }
 0x276   : > { %1785 = vmatpush1.bf16.msra.mxu1 %v1784_v27 }
 0x277   : > { %1787 = vmatprep.subr.bf16.mxu1 %v1786_v28 }
 0x27a   : > { %1789 = vmatpush1.bf16.msra.mxu1 %v1788_v35 }
 0x27b   : > { %1791 = vmatprep.subr.bf16.mxu1 %v1790_v36 }
 0x27e   : > { %1793 = vmatpush1.bf16.msra.mxu1 %v1792_v41 }
 0x27f   : > { %1795 = vmatprep.subr.bf16.mxu1 %v1794_v42 }
 0x282   : > { %1797 = vmatpush1.bf16.msra.mxu1 %v1796_v47 }
 0x283   : > { %1799 = vmatprep.subr.bf16.mxu1 %v1798_v48 }
 0x286   : > { %1801 = vmatpush1.bf16.msra.mxu1 %v1800_v53 }
 0x287   : > { %1803 = vmatprep.subr.bf16.mxu1 %v1802_v54 }
 0x28a   : > { %1805 = vmatpush1.bf16.msra.mxu1 %v1804_v59 }
 0x28b   : > { %1807 = vmatprep.subr.bf16.mxu1 %v1806_v60 }
 0x28e   : > { %1809 = vmatpush1.bf16.msra.mxu1 %v1808_v1 }
 0x28f   : > { %1811 = vmatprep.subr.bf16.mxu1 %v1810_v2 }
 0x292   : > { %1813 = vmatpush1.bf16.msra.mxu1 %v1812_v7 }
 0x295   : > { %1264 = vmatmul.mubr.f32.vlgmr.msra.gmra.mrb[0].mxu1 %v1193_v10 }
 0x368   : > { %v1265_v16 = vpop.f32.mrb[0].mxu1 }
 0x369   : > { %v1284_v18 = vmul.f32 %v1277_v13, %v1265_v16  ;;  %v1267_v19 = vpop.f32.mrb[1].mxu1 }
 0x36a   : > { %v1285_v20 = vmul.f32 %v1281_v14, %v1267_v19 }
 0x36b   : > { %v1298_v21 = vadd.f32 %v1291_v15, %v1284_v18 }
 0x36c   : > { %v1299_v22 = vadd.f32 %v1295_v17, %v1285_v20 }
 0x36d   : > { %v1300_v24 = vadd.f32 %v1892_v23, %v1298_v21 }
 0x36e   : > { %v1301_v26 = vadd.f32 %v1893_v25, %v1299_v22 }
 0x36f   : > { %v1302_v27 = vmax.f32 %v1300_v24, 0.0 }
 0x370   : > { %v1303_v32 = vmax.f32 %v1301_v26, 0.0 }
 0x371   : > { %1304 = vst [vmem:[%s323_s19] sm:$0xff] %v1302_v27 }
 0x372   : > { %1305 = vst [vmem:[%s323_s19 + $0x8] sm:$0xff] %v1303_v32 }
 0x373   : > { %1993 = shalt.err (!%p1990_p2)
}
 0x374   : > { %s1994_s12 = scalar_lea.hbm %s2326_s20, 256  ;;  %s1998_s21 = scalar_lea.hbm %s2377_s7, 512 }
 0x375   : > { %p1995_p13 = scmp.ne.s32.totalorder %s2326_s20, %s1994_s12  ;;  %p1999_p4 = scmp.lt.u32.totalorder %s2326_s20, %s2377_s7 }
 0x376   : > { %p2000_p5 = scmp.lt.u32.totalorder %s1998_s21, %s1994_s12  ;;  %p2002_p11 = scmp.lt.u32.totalorder %s1994_s12, %s2326_s20 }
 0x377   : > { %p1996_p6 = pnand %p1995_p13, %p2391_p0 }
 0x378   : > { %p2001_p8 = por %p2000_p5, %p1999_p4 }
 0x379   : > { %p1997_p10 = pneg %p1996_p6 }
 0x37a   : > { %p2003_p1 = por %p2002_p11, %p2001_p8 }
 0x37c   : > { %p2004_p3 = pnand %p2003_p1, %p1997_p10 }
 0x37e   : > { %2007 = shalt.err (!%p2004_p3)
}
 0x37f   : > { %1832 = dma.vmem_to_hbm [thread:$0]  (%p2391_p0), %s2328_s23, 256, %s2326_s20, %s1307_s28  }
 0x380 PF: > { %s1333_s30 = sand.u32 1, %s2038_s24   ;;  %p2392_p7 = scmp.ne.s32.totalorder %s2382_s8, 0 }
 0x381   : > { %p2393_p9 = scmp.ge.s32.totalorder %s2050_s27, 2  ;;  %s1334_s9 = scalar_lea.sflag [#allocation6], %s1333_s30 }
 0x383   : > { %p1846_p12 = pnand %p2393_p9, %p2392_p7 }
 0x385   : > { %2033 = dma.done.wait (!%p1846_p12), %s1334_s9, 256  }
 0x386   : > { %2035 = vsyncadd (!%p1846_p12), %s1334_s9, 4294967040  ;;  %p21_p2 = scmp.ge.s32.totalorder %s2209_s13, 4   ;;  %s2394_s24 = smov %s2042_s25 }
 0x387   : > { %s2395_s25 = smov %s2046_s26  ;;  %s2396_s26 = smov %s2225_s17 }
 0x388   : > { %s2397_s27 = smov %s2209_s13  ;;  %23 = sbr.rel (!%p21_p2) target bundleno = 6 (0x6), region = 105 }
 0x38f   :  { %1339 = vsyncpa [#allocation5], 1 }
 0x390   :  { %1341 = vsyncpa [#allocation5 + $0x1], 1 }
 0x391   :  { %1342 = vsyncpa [#allocation8], 1 }
 0x392   :  { %1343 = vsyncpa [#allocation6], 1 }
 0x393   :  { %1345 = vsyncpa [#allocation6 + $0x1], 1 }

</bundles_post_ra>
